<compile_context>
chip_gen: v7x
topology: tpu7x:2x2x1
jax: 0.10.0
libtpu: 0.0.40
codegen_flags: <defaults>
</compile_context>

<pallas_src>
import jax
import jax.numpy as jnp
from jax.experimental import pallas as pl
from jax.experimental.pallas import tpu as pltpu

# ---------------- Config (small TinyBERT-like) ----------------
VOCAB = 100
HIDDEN = 32
SEQ = 8
BATCH = 2
HEADS = 4
HEAD_DIM = HIDDEN // HEADS
INTER = 64
LAYERS = 2
NUM_LABELS = 5
LN_EPS = 1e-12
BS = BATCH * SEQ

_N_EMB_ARGS = 6      # we, pe, te, bias, emb_ln_g, emb_ln_b
_N_LAYER_ARGS = 12   # wqkv, bqkv, wo, bo, g1, b1, wi, bi, wd, bd, g2, b2
_N_HEAD_ARGS = 4     # pooler_w, pooler_b, cls_w, cls_b


# ---------------- In-kernel helpers (f32 VPU/EUP math) ----------------
def _layernorm(x, gamma, beta):
    mu = jnp.mean(x, axis=-1, keepdims=True)
    var = jnp.mean((x - mu) ** 2, axis=-1, keepdims=True)
    return (x - mu) * jax.lax.rsqrt(var + LN_EPS) * gamma + beta


def _gelu(x):
    # tanh approximation of GELU
    # TODO(synk): exact erf-based GELU if bit-exact parity with HF 'gelu' is required
    c = 0.7978845608028654  # sqrt(2/pi)
    return 0.5 * x * (1.0 + jnp.tanh(c * (x + 0.044715 * x * x * x)))


# ---------------- Fused Pallas kernel ----------------
def bert_fused_kernel(*refs):
    we_ref, pe_ref, te_ref, bias_ref, eg_ref, eb_ref = refs[:_N_EMB_ARGS]
    lrefs = refs[_N_EMB_ARGS:_N_EMB_ARGS + _N_LAYER_ARGS * LAYERS]
    head_start = _N_EMB_ARGS + _N_LAYER_ARGS * LAYERS
    wp_ref, bp_ref, wc_ref, bc_ref = refs[head_start:head_start + _N_HEAD_ARGS]
    out_ref = refs[head_start + _N_HEAD_ARGS]
    ctx_ref = refs[head_start + _N_HEAD_ARGS + 1]       # VMEM scratch [BS, H] f32

    # ---- Embeddings: sum + LayerNorm ----
    x3 = we_ref[...] + pe_ref[...] + te_ref[...]        # [B, S, H] f32
    x3 = _layernorm(x3, eg_ref[...], eb_ref[...])
    x2d = x3.reshape(BS, HIDDEN)                        # [B*S, H] f32

    bias = bias_ref[...]                                # [BS, BS] additive (batch-block + mask)
    scale = 1.0 / (HEAD_DIM ** 0.5)

    # ---- Encoder layers (statically unrolled) ----
    for l in range(LAYERS):
        (wqkv, bqkv, wo, bo, g1, b1,
         wi, bi, wd, bd, g2, b2) = lrefs[_N_LAYER_ARGS * l:_N_LAYER_ARGS * (l + 1)]

        xb = x2d.astype(jnp.bfloat16)
        qkv = jnp.dot(xb, wqkv[...],
                      preferred_element_type=jnp.float32) + bqkv[...]   # [BS, 3H] f32

        # Per-head attention as pure 2-D matmuls; cross-batch keys masked by `bias`.
        for h in range(HEADS):
            lo = h * HEAD_DIM
            qh = qkv[:, lo:lo + HEAD_DIM]                               # [BS, hd]
            kh = qkv[:, HIDDEN + lo:HIDDEN + lo + HEAD_DIM]             # [BS, hd]
            vh = qkv[:, 2 * HIDDEN + lo:2 * HIDDEN + lo + HEAD_DIM]     # [BS, hd]

            s = jnp.dot(qh, kh.T, preferred_element_type=jnp.float32) * scale + bias
            s = s - jnp.max(s, axis=-1, keepdims=True)
            p = jnp.exp(s)
            pinv = pl.reciprocal(jnp.sum(p, axis=-1, keepdims=True), approx=True)
            ctx_ref[:, lo:lo + HEAD_DIM] = (
                jnp.dot(p, vh, preferred_element_type=jnp.float32) * pinv)

        attn = jnp.dot(ctx_ref[...].astype(jnp.bfloat16), wo[...],
                       preferred_element_type=jnp.float32) + bo[...]
        x1 = _layernorm(x2d + attn, g1[...], b1[...])

        hmid = _gelu(jnp.dot(x1.astype(jnp.bfloat16), wi[...],
                             preferred_element_type=jnp.float32) + bi[...])
        ffn = jnp.dot(hmid.astype(jnp.bfloat16), wd[...],
                      preferred_element_type=jnp.float32) + bd[...]
        x2d = _layernorm(x1 + ffn, g2[...], b2[...])

    # ---- Pooler (tanh(W @ CLS)) + dropout(eval=identity) + classifier ----
    cls = x2d.reshape(BATCH, SEQ, HIDDEN)[:, 0, :]                      # [B, H]
    pooled = jnp.tanh(jnp.dot(cls.astype(jnp.bfloat16), wp_ref[...],
                              preferred_element_type=jnp.float32) + bp_ref[...])
    out_ref[...] = jnp.dot(pooled.astype(jnp.bfloat16), wc_ref[...],
                           preferred_element_type=jnp.float32) + bc_ref[...]


# ---------------- pallas_call wrapper ----------------
def _vmem_spec():
    return pl.BlockSpec(memory_space=pltpu.MemorySpace.VMEM)


def bert_forward(params, input_ids, attention_mask, token_type_ids):
    # Glue (gather + tiny mask arithmetic) stays in plain JAX.
    we = params['word_emb'][input_ids]                  # [B, S, H]
    te = params['type_emb'][token_type_ids]             # [B, S, H]
    pe = params['pos_emb'][None, :, :]                  # [1, S, H]

    # Additive attention bias over flattened [B*S] keys:
    #   cross-batch entries -> -1e9 (block-diagonal), masked tokens -> -1e9 (column bias).
    mask_bias = (1.0 - attention_mask.astype(jnp.float32)) * -1e9       # [B, S]
    batch_ids = jnp.repeat(jnp.arange(BATCH), SEQ)                      # [BS]
    block_bias = jnp.where(batch_ids[:, None] == batch_ids[None, :], 0.0, -1e9)
    full_bias = block_bias + mask_bias.reshape(BS)[None, :]             # [BS, BS]

    flat_layer_params = [p for lp in params['layers'] for p in lp]
    args = [we, pe, te, full_bias, params['emb_ln_g'], params['emb_ln_b'],
            *flat_layer_params,
            params['pooler_w'], params['pooler_b'],
            params['cls_w'], params['cls_b']]

    return pl.pallas_call(
        bert_fused_kernel,
        out_shape=jax.ShapeDtypeStruct((BATCH, NUM_LABELS), jnp.float32),
        in_specs=[_vmem_spec() for _ in range(len(args))],
        out_specs=_vmem_spec(),
        scratch_shapes=[pltpu.VMEM((BS, HIDDEN), jnp.float32)],
    )(*args)


# ---------------- Parameter init (deterministic, synthetic) ----------------
def init_params(key):
    keys = iter(jax.random.split(key, 8 + LAYERS * 8))

    def nrm_f32(shape, scale=0.02):
        return (scale * jax.random.normal(next(keys), shape)).astype(jnp.float32)

    def nrm_bf16(shape, scale=0.02):
        return nrm_f32(shape, scale).astype(jnp.bfloat16)

    params = {
        'word_emb': nrm_f32((VOCAB, HIDDEN)),
        'pos_emb': nrm_f32((SEQ, HIDDEN)),
        'type_emb': nrm_f32((2, HIDDEN)),
        'emb_ln_g': jnp.ones((1, HIDDEN), jnp.float32),
        'emb_ln_b': jnp.zeros((1, HIDDEN), jnp.float32),
        'layers': [],
        'pooler_w': nrm_bf16((HIDDEN, HIDDEN)),
        'pooler_b': jnp.zeros((1, HIDDEN), jnp.float32),
        'cls_w': nrm_bf16((HIDDEN, NUM_LABELS)),
        'cls_b': jnp.zeros((1, NUM_LABELS), jnp.float32),
    }
    for _ in range(LAYERS):
        lp = (
            nrm_bf16((HIDDEN, 3 * HIDDEN)), jnp.zeros((1, 3 * HIDDEN), jnp.float32),  # Wqkv, bqkv
            nrm_bf16((HIDDEN, HIDDEN)), jnp.zeros((1, HIDDEN), jnp.float32),          # Wo, bo
            jnp.ones((1, HIDDEN), jnp.float32), jnp.zeros((1, HIDDEN), jnp.float32),  # LN1
            nrm_bf16((HIDDEN, INTER)), jnp.zeros((1, INTER), jnp.float32),            # Wi, bi
            nrm_bf16((INTER, HIDDEN)), jnp.zeros((1, HIDDEN), jnp.float32),           # Wd, bd
            jnp.ones((1, HIDDEN), jnp.float32), jnp.zeros((1, HIDDEN), jnp.float32),  # LN2
        )
        params['layers'].append(lp)
    return params


if __name__ == "__main__":
    key = jax.random.PRNGKey(0)
    pkey, ikey = jax.random.split(key)
    params = init_params(pkey)

    input_ids = jax.random.randint(ikey, (BATCH, SEQ), 0, VOCAB, dtype=jnp.int32)
    attention_mask = jnp.ones((BATCH, SEQ), dtype=jnp.int32).at[1, SEQ - 2:].set(0)
    token_type_ids = jnp.zeros((BATCH, SEQ), dtype=jnp.int32)

    logits = jax.jit(bert_forward)(params, input_ids, attention_mask, token_type_ids)
    logits = jax.block_until_ready(logits)

    assert logits.shape == (BATCH, NUM_LABELS)
    assert logits.dtype == jnp.float32
    print("KERNEL_OK")
</pallas_src>

<mosaic_0001>
module attributes {stable_mosaic.version = 11 : i64} {
  func.func @bert_fused_kernel(%arg0: memref<2x8x32xf32, #tpu.memory_space<vmem>>, %arg1: memref<1x8x32xf32, #tpu.memory_space<vmem>>, %arg2: memref<2x8x32xf32, #tpu.memory_space<vmem>>, %arg3: memref<16x16xf32, #tpu.memory_space<vmem>>, %arg4: memref<1x32xf32, #tpu.memory_space<vmem>>, %arg5: memref<1x32xf32, #tpu.memory_space<vmem>>, %arg6: memref<32x96xbf16, #tpu.memory_space<vmem>>, %arg7: memref<1x96xf32, #tpu.memory_space<vmem>>, %arg8: memref<32x32xbf16, #tpu.memory_space<vmem>>, %arg9: memref<1x32xf32, #tpu.memory_space<vmem>>, %arg10: memref<1x32xf32, #tpu.memory_space<vmem>>, %arg11: memref<1x32xf32, #tpu.memory_space<vmem>>, %arg12: memref<32x64xbf16, #tpu.memory_space<vmem>>, %arg13: memref<1x64xf32, #tpu.memory_space<vmem>>, %arg14: memref<64x32xbf16, #tpu.memory_space<vmem>>, %arg15: memref<1x32xf32, #tpu.memory_space<vmem>>, %arg16: memref<1x32xf32, #tpu.memory_space<vmem>>, %arg17: memref<1x32xf32, #tpu.memory_space<vmem>>, %arg18: memref<32x96xbf16, #tpu.memory_space<vmem>>, %arg19: memref<1x96xf32, #tpu.memory_space<vmem>>, %arg20: memref<32x32xbf16, #tpu.memory_space<vmem>>, %arg21: memref<1x32xf32, #tpu.memory_space<vmem>>, %arg22: memref<1x32xf32, #tpu.memory_space<vmem>>, %arg23: memref<1x32xf32, #tpu.memory_space<vmem>>, %arg24: memref<32x64xbf16, #tpu.memory_space<vmem>>, %arg25: memref<1x64xf32, #tpu.memory_space<vmem>>, %arg26: memref<64x32xbf16, #tpu.memory_space<vmem>>, %arg27: memref<1x32xf32, #tpu.memory_space<vmem>>, %arg28: memref<1x32xf32, #tpu.memory_space<vmem>>, %arg29: memref<1x32xf32, #tpu.memory_space<vmem>>, %arg30: memref<32x32xbf16, #tpu.memory_space<vmem>>, %arg31: memref<1x32xf32, #tpu.memory_space<vmem>>, %arg32: memref<32x5xbf16, #tpu.memory_space<vmem>>, %arg33: memref<1x5xf32, #tpu.memory_space<vmem>>, %arg34: memref<2x5xf32, #tpu.memory_space<vmem>>, %arg35: memref<16x32xf32, #tpu.memory_space<vmem>>) attributes {dimension_semantics = [], scalar_prefetch = 0 : i64, scratch_operands = 1 : i64, tpu.core_type = #tpu.core_type<tc>} {
    %c0 = arith.constant 0 : index
    %c0_0 = arith.constant 0 : index
    %c0_1 = arith.constant 0 : index
    %0 = vector.load %arg0[%c0, %c0_0, %c0_1] : memref<2x8x32xf32, #tpu.memory_space<vmem>>, vector<2x8x32xf32>
    %c0_2 = arith.constant 0 : index
    %c0_3 = arith.constant 0 : index
    %c0_4 = arith.constant 0 : index
    %1 = vector.load %arg1[%c0_2, %c0_3, %c0_4] : memref<1x8x32xf32, #tpu.memory_space<vmem>>, vector<1x8x32xf32>
    %2 = vector.broadcast %1 : vector<1x8x32xf32> to vector<2x8x32xf32>
    %3 = arith.addf %0, %2 : vector<2x8x32xf32>
    %c0_5 = arith.constant 0 : index
    %c0_6 = arith.constant 0 : index
    %c0_7 = arith.constant 0 : index
    %4 = vector.load %arg2[%c0_5, %c0_6, %c0_7] : memref<2x8x32xf32, #tpu.memory_space<vmem>>, vector<2x8x32xf32>
    %5 = arith.addf %3, %4 : vector<2x8x32xf32>
    %c0_8 = arith.constant 0 : index
    %c0_9 = arith.constant 0 : index
    %6 = vector.load %arg4[%c0_8, %c0_9] : memref<1x32xf32, #tpu.memory_space<vmem>>, vector<1x32xf32>
    %c0_10 = arith.constant 0 : index
    %c0_11 = arith.constant 0 : index
    %7 = vector.load %arg5[%c0_10, %c0_11] : memref<1x32xf32, #tpu.memory_space<vmem>>, vector<1x32xf32>
    %cst = arith.constant dense<0.000000e+00> : vector<2x8xf32>
    %8 = vector.multi_reduction <add>, %5, %cst [2] : vector<2x8x32xf32> to vector<2x8xf32>
    %9 = vector.shape_cast %8 : vector<2x8xf32> to vector<2x8x1xf32>
    %cst_12 = arith.constant 3.200000e+01 : f32
    %10 = vector.broadcast %cst_12 : f32 to vector<2x8x1xf32>
    %11 = arith.divf %9, %10 : vector<2x8x1xf32>
    %12 = vector.broadcast %11 : vector<2x8x1xf32> to vector<2x8x32xf32>
    %13 = arith.subf %5, %12 : vector<2x8x32xf32>
    %14 = arith.mulf %13, %13 : vector<2x8x32xf32>
    %cst_13 = arith.constant dense<0.000000e+00> : vector<2x8xf32>
    %15 = vector.multi_reduction <add>, %14, %cst_13 [2] : vector<2x8x32xf32> to vector<2x8xf32>
    %16 = vector.shape_cast %15 : vector<2x8xf32> to vector<2x8x1xf32>
    %cst_14 = arith.constant 3.200000e+01 : f32
    %17 = vector.broadcast %cst_14 : f32 to vector<2x8x1xf32>
    %18 = arith.divf %16, %17 : vector<2x8x1xf32>
    %19 = vector.broadcast %11 : vector<2x8x1xf32> to vector<2x8x32xf32>
    %20 = arith.subf %5, %19 : vector<2x8x32xf32>
    %cst_15 = arith.constant 9.99999996E-13 : f32
    %21 = vector.broadcast %cst_15 : f32 to vector<2x8x1xf32>
    %22 = arith.addf %18, %21 : vector<2x8x1xf32>
    %23 = math.rsqrt %22 : vector<2x8x1xf32>
    %24 = vector.broadcast %23 : vector<2x8x1xf32> to vector<2x8x32xf32>
    %25 = arith.mulf %20, %24 : vector<2x8x32xf32>
    %26 = vector.shape_cast %6 : vector<1x32xf32> to vector<1x1x32xf32>
    %27 = vector.broadcast %26 : vector<1x1x32xf32> to vector<2x8x32xf32>
    %28 = arith.mulf %25, %27 : vector<2x8x32xf32>
    %29 = vector.shape_cast %7 : vector<1x32xf32> to vector<1x1x32xf32>
    %30 = vector.broadcast %29 : vector<1x1x32xf32> to vector<2x8x32xf32>
    %31 = arith.addf %28, %30 : vector<2x8x32xf32>
    %32 = vector.shape_cast %31 : vector<2x8x32xf32> to vector<16x32xf32>
    %c0_16 = arith.constant 0 : index
    %c0_17 = arith.constant 0 : index
    %33 = vector.load %arg3[%c0_16, %c0_17] : memref<16x16xf32, #tpu.memory_space<vmem>>, vector<16x16xf32>
    %34 = arith.truncf %32 : vector<16x32xf32> to vector<16x32xbf16>
    %c0_18 = arith.constant 0 : index
    %c0_19 = arith.constant 0 : index
    %35 = vector.load %arg6[%c0_18, %c0_19] : memref<32x96xbf16, #tpu.memory_space<vmem>>, vector<32x96xbf16>
    %cst_20 = arith.constant dense<0.000000e+00> : vector<16x96xf32>
    %36 = tpu.matmul %34, %35, %cst_20 {dimension_numbers = #tpu.dot_dimension_numbers<[1], [0], [0], [1], [0, 0, 1, 1], [], []>} : vector<16x32xbf16>, vector<32x96xbf16>, vector<16x96xf32> -> vector<16x96xf32>
    %c0_21 = arith.constant 0 : index
    %c0_22 = arith.constant 0 : index
    %37 = vector.load %arg7[%c0_21, %c0_22] : memref<1x96xf32, #tpu.memory_space<vmem>>, vector<1x96xf32>
    %38 = vector.broadcast %37 : vector<1x96xf32> to vector<16x96xf32>
    %39 = arith.addf %36, %38 : vector<16x96xf32>
    %40 = vector.extract_strided_slice %39 {offsets = [0, 0], sizes = [16, 8], strides = [1, 1]} : vector<16x96xf32> to vector<16x8xf32>
    %41 = vector.extract_strided_slice %39 {offsets = [0, 32], sizes = [16, 8], strides = [1, 1]} : vector<16x96xf32> to vector<16x8xf32>
    %42 = vector.extract_strided_slice %39 {offsets = [0, 64], sizes = [16, 8], strides = [1, 1]} : vector<16x96xf32> to vector<16x8xf32>
    %43 = tpu.transpose %41, [1, 0] : vector<16x8xf32> -> vector<8x16xf32>
    %cst_23 = arith.constant dense<0.000000e+00> : vector<16x16xf32>
    %44 = tpu.matmul %40, %43, %cst_23 {dimension_numbers = #tpu.dot_dimension_numbers<[1], [0], [0], [1], [0, 0, 1, 1], [], []>} : vector<16x8xf32>, vector<8x16xf32>, vector<16x16xf32> -> vector<16x16xf32>
    %cst_24 = arith.constant 0.353553385 : f32
    %45 = vector.broadcast %cst_24 : f32 to vector<16x16xf32>
    %46 = arith.mulf %44, %45 : vector<16x16xf32>
    %47 = arith.addf %46, %33 : vector<16x16xf32>
    %cst_25 = arith.constant dense<0xFF800000> : vector<16xf32>
    %48 = vector.multi_reduction <maximumf>, %47, %cst_25 [1] : vector<16x16xf32> to vector<16xf32>
    %49 = vector.shape_cast %48 : vector<16xf32> to vector<16x1xf32>
    %50 = vector.broadcast %49 : vector<16x1xf32> to vector<16x16xf32>
    %51 = arith.subf %47, %50 : vector<16x16xf32>
    %52 = math.exp %51 : vector<16x16xf32>
    %cst_26 = arith.constant dense<0.000000e+00> : vector<16xf32>
    %53 = vector.multi_reduction <add>, %52, %cst_26 [1] : vector<16x16xf32> to vector<16xf32>
    %54 = vector.shape_cast %53 : vector<16xf32> to vector<16x1xf32>
    %55 = tpu.reciprocal %54 {approx = true} : vector<16x1xf32> -> vector<16x1xf32>
    %cst_27 = arith.constant dense<0.000000e+00> : vector<16x8xf32>
    %56 = tpu.matmul %52, %42, %cst_27 {dimension_numbers = #tpu.dot_dimension_numbers<[1], [0], [0], [1], [0, 0, 1, 1], [], []>} : vector<16x16xf32>, vector<16x8xf32>, vector<16x8xf32> -> vector<16x8xf32>
    %57 = vector.broadcast %55 : vector<16x1xf32> to vector<16x8xf32>
    %58 = arith.mulf %56, %57 : vector<16x8xf32>
    %c0_28 = arith.constant 0 : index
    %c0_29 = arith.constant 0 : index
    %59 = vector.load %arg35[%c0_28, %c0_29] : memref<16x32xf32, #tpu.memory_space<vmem>>, vector<16x8xf32>
    tpu.vector_store %arg35[%c0_28, %c0_29], %58 {strides = array<i32>} : memref<16x32xf32, #tpu.memory_space<vmem>>, vector<16x8xf32>,
    %60 = vector.extract_strided_slice %39 {offsets = [0, 8], sizes = [16, 8], strides = [1, 1]} : vector<16x96xf32> to vector<16x8xf32>
    %61 = vector.extract_strided_slice %39 {offsets = [0, 40], sizes = [16, 8], strides = [1, 1]} : vector<16x96xf32> to vector<16x8xf32>
    %62 = vector.extract_strided_slice %39 {offsets = [0, 72], sizes = [16, 8], strides = [1, 1]} : vector<16x96xf32> to vector<16x8xf32>
    %63 = tpu.transpose %61, [1, 0] : vector<16x8xf32> -> vector<8x16xf32>
    %cst_30 = arith.constant dense<0.000000e+00> : vector<16x16xf32>
    %64 = tpu.matmul %60, %63, %cst_30 {dimension_numbers = #tpu.dot_dimension_numbers<[1], [0], [0], [1], [0, 0, 1, 1], [], []>} : vector<16x8xf32>, vector<8x16xf32>, vector<16x16xf32> -> vector<16x16xf32>
    %cst_31 = arith.constant 0.353553385 : f32
    %65 = vector.broadcast %cst_31 : f32 to vector<16x16xf32>
    %66 = arith.mulf %64, %65 : vector<16x16xf32>
    %67 = arith.addf %66, %33 : vector<16x16xf32>
    %cst_32 = arith.constant dense<0xFF800000> : vector<16xf32>
    %68 = vector.multi_reduction <maximumf>, %67, %cst_32 [1] : vector<16x16xf32> to vector<16xf32>
    %69 = vector.shape_cast %68 : vector<16xf32> to vector<16x1xf32>
    %70 = vector.broadcast %69 : vector<16x1xf32> to vector<16x16xf32>
    %71 = arith.subf %67, %70 : vector<16x16xf32>
    %72 = math.exp %71 : vector<16x16xf32>
    %cst_33 = arith.constant dense<0.000000e+00> : vector<16xf32>
    %73 = vector.multi_reduction <add>, %72, %cst_33 [1] : vector<16x16xf32> to vector<16xf32>
    %74 = vector.shape_cast %73 : vector<16xf32> to vector<16x1xf32>
    %75 = tpu.reciprocal %74 {approx = true} : vector<16x1xf32> -> vector<16x1xf32>
    %cst_34 = arith.constant dense<0.000000e+00> : vector<16x8xf32>
    %76 = tpu.matmul %72, %62, %cst_34 {dimension_numbers = #tpu.dot_dimension_numbers<[1], [0], [0], [1], [0, 0, 1, 1], [], []>} : vector<16x16xf32>, vector<16x8xf32>, vector<16x8xf32> -> vector<16x8xf32>
    %77 = vector.broadcast %75 : vector<16x1xf32> to vector<16x8xf32>
    %78 = arith.mulf %76, %77 : vector<16x8xf32>
    %c0_35 = arith.constant 0 : index
    %c8 = arith.constant 8 : index
    %79 = vector.load %arg35[%c0_35, %c8] : memref<16x32xf32, #tpu.memory_space<vmem>>, vector<16x8xf32>
    tpu.vector_store %arg35[%c0_35, %c8], %78 {strides = array<i32>} : memref<16x32xf32, #tpu.memory_space<vmem>>, vector<16x8xf32>,
    %80 = vector.extract_strided_slice %39 {offsets = [0, 16], sizes = [16, 8], strides = [1, 1]} : vector<16x96xf32> to vector<16x8xf32>
    %81 = vector.extract_strided_slice %39 {offsets = [0, 48], sizes = [16, 8], strides = [1, 1]} : vector<16x96xf32> to vector<16x8xf32>
    %82 = vector.extract_strided_slice %39 {offsets = [0, 80], sizes = [16, 8], strides = [1, 1]} : vector<16x96xf32> to vector<16x8xf32>
    %83 = tpu.transpose %81, [1, 0] : vector<16x8xf32> -> vector<8x16xf32>
    %cst_36 = arith.constant dense<0.000000e+00> : vector<16x16xf32>
    %84 = tpu.matmul %80, %83, %cst_36 {dimension_numbers = #tpu.dot_dimension_numbers<[1], [0], [0], [1], [0, 0, 1, 1], [], []>} : vector<16x8xf32>, vector<8x16xf32>, vector<16x16xf32> -> vector<16x16xf32>
    %cst_37 = arith.constant 0.353553385 : f32
    %85 = vector.broadcast %cst_37 : f32 to vector<16x16xf32>
    %86 = arith.mulf %84, %85 : vector<16x16xf32>
    %87 = arith.addf %86, %33 : vector<16x16xf32>
    %cst_38 = arith.constant dense<0xFF800000> : vector<16xf32>
    %88 = vector.multi_reduction <maximumf>, %87, %cst_38 [1] : vector<16x16xf32> to vector<16xf32>
    %89 = vector.shape_cast %88 : vector<16xf32> to vector<16x1xf32>
    %90 = vector.broadcast %89 : vector<16x1xf32> to vector<16x16xf32>
    %91 = arith.subf %87, %90 : vector<16x16xf32>
    %92 = math.exp %91 : vector<16x16xf32>
    %cst_39 = arith.constant dense<0.000000e+00> : vector<16xf32>
    %93 = vector.multi_reduction <add>, %92, %cst_39 [1] : vector<16x16xf32> to vector<16xf32>
    %94 = vector.shape_cast %93 : vector<16xf32> to vector<16x1xf32>
    %95 = tpu.reciprocal %94 {approx = true} : vector<16x1xf32> -> vector<16x1xf32>
    %cst_40 = arith.constant dense<0.000000e+00> : vector<16x8xf32>
    %96 = tpu.matmul %92, %82, %cst_40 {dimension_numbers = #tpu.dot_dimension_numbers<[1], [0], [0], [1], [0, 0, 1, 1], [], []>} : vector<16x16xf32>, vector<16x8xf32>, vector<16x8xf32> -> vector<16x8xf32>
    %97 = vector.broadcast %95 : vector<16x1xf32> to vector<16x8xf32>
    %98 = arith.mulf %96, %97 : vector<16x8xf32>
    %c0_41 = arith.constant 0 : index
    %c16 = arith.constant 16 : index
    %99 = vector.load %arg35[%c0_41, %c16] : memref<16x32xf32, #tpu.memory_space<vmem>>, vector<16x8xf32>
    tpu.vector_store %arg35[%c0_41, %c16], %98 {strides = array<i32>} : memref<16x32xf32, #tpu.memory_space<vmem>>, vector<16x8xf32>,
    %100 = vector.extract_strided_slice %39 {offsets = [0, 24], sizes = [16, 8], strides = [1, 1]} : vector<16x96xf32> to vector<16x8xf32>
    %101 = vector.extract_strided_slice %39 {offsets = [0, 56], sizes = [16, 8], strides = [1, 1]} : vector<16x96xf32> to vector<16x8xf32>
    %102 = vector.extract_strided_slice %39 {offsets = [0, 88], sizes = [16, 8], strides = [1, 1]} : vector<16x96xf32> to vector<16x8xf32>
    %103 = tpu.transpose %101, [1, 0] : vector<16x8xf32> -> vector<8x16xf32>
    %cst_42 = arith.constant dense<0.000000e+00> : vector<16x16xf32>
    %104 = tpu.matmul %100, %103, %cst_42 {dimension_numbers = #tpu.dot_dimension_numbers<[1], [0], [0], [1], [0, 0, 1, 1], [], []>} : vector<16x8xf32>, vector<8x16xf32>, vector<16x16xf32> -> vector<16x16xf32>
    %cst_43 = arith.constant 0.353553385 : f32
    %105 = vector.broadcast %cst_43 : f32 to vector<16x16xf32>
    %106 = arith.mulf %104, %105 : vector<16x16xf32>
    %107 = arith.addf %106, %33 : vector<16x16xf32>
    %cst_44 = arith.constant dense<0xFF800000> : vector<16xf32>
    %108 = vector.multi_reduction <maximumf>, %107, %cst_44 [1] : vector<16x16xf32> to vector<16xf32>
    %109 = vector.shape_cast %108 : vector<16xf32> to vector<16x1xf32>
    %110 = vector.broadcast %109 : vector<16x1xf32> to vector<16x16xf32>
    %111 = arith.subf %107, %110 : vector<16x16xf32>
    %112 = math.exp %111 : vector<16x16xf32>
    %cst_45 = arith.constant dense<0.000000e+00> : vector<16xf32>
    %113 = vector.multi_reduction <add>, %112, %cst_45 [1] : vector<16x16xf32> to vector<16xf32>
    %114 = vector.shape_cast %113 : vector<16xf32> to vector<16x1xf32>
    %115 = tpu.reciprocal %114 {approx = true} : vector<16x1xf32> -> vector<16x1xf32>
    %cst_46 = arith.constant dense<0.000000e+00> : vector<16x8xf32>
    %116 = tpu.matmul %112, %102, %cst_46 {dimension_numbers = #tpu.dot_dimension_numbers<[1], [0], [0], [1], [0, 0, 1, 1], [], []>} : vector<16x16xf32>, vector<16x8xf32>, vector<16x8xf32> -> vector<16x8xf32>
    %117 = vector.broadcast %115 : vector<16x1xf32> to vector<16x8xf32>
    %118 = arith.mulf %116, %117 : vector<16x8xf32>
    %c0_47 = arith.constant 0 : index
    %c24 = arith.constant 24 : index
    %119 = vector.load %arg35[%c0_47, %c24] : memref<16x32xf32, #tpu.memory_space<vmem>>, vector<16x8xf32>
    tpu.vector_store %arg35[%c0_47, %c24], %118 {strides = array<i32>} : memref<16x32xf32, #tpu.memory_space<vmem>>, vector<16x8xf32>,
    %c0_48 = arith.constant 0 : index
    %c0_49 = arith.constant 0 : index
    %120 = vector.load %arg35[%c0_48, %c0_49] : memref<16x32xf32, #tpu.memory_space<vmem>>, vector<16x32xf32>
    %121 = arith.truncf %120 : vector<16x32xf32> to vector<16x32xbf16>
    %c0_50 = arith.constant 0 : index
    %c0_51 = arith.constant 0 : index
    %122 = vector.load %arg8[%c0_50, %c0_51] : memref<32x32xbf16, #tpu.memory_space<vmem>>, vector<32x32xbf16>
    %cst_52 = arith.constant dense<0.000000e+00> : vector<16x32xf32>
    %123 = tpu.matmul %121, %122, %cst_52 {dimension_numbers = #tpu.dot_dimension_numbers<[1], [0], [0], [1], [0, 0, 1, 1], [], []>} : vector<16x32xbf16>, vector<32x32xbf16>, vector<16x32xf32> -> vector<16x32xf32>
    %c0_53 = arith.constant 0 : index
    %c0_54 = arith.constant 0 : index
    %124 = vector.load %arg9[%c0_53, %c0_54] : memref<1x32xf32, #tpu.memory_space<vmem>>, vector<1x32xf32>
    %125 = vector.broadcast %124 : vector<1x32xf32> to vector<16x32xf32>
    %126 = arith.addf %123, %125 : vector<16x32xf32>
    %127 = arith.addf %32, %126 : vector<16x32xf32>
    %c0_55 = arith.constant 0 : index
    %c0_56 = arith.constant 0 : index
    %128 = vector.load %arg10[%c0_55, %c0_56] : memref<1x32xf32, #tpu.memory_space<vmem>>, vector<1x32xf32>
    %c0_57 = arith.constant 0 : index
    %c0_58 = arith.constant 0 : index
    %129 = vector.load %arg11[%c0_57, %c0_58] : memref<1x32xf32, #tpu.memory_space<vmem>>, vector<1x32xf32>
    %cst_59 = arith.constant dense<0.000000e+00> : vector<16xf32>
    %130 = vector.multi_reduction <add>, %127, %cst_59 [1] : vector<16x32xf32> to vector<16xf32>
    %131 = vector.shape_cast %130 : vector<16xf32> to vector<16x1xf32>
    %cst_60 = arith.constant 3.200000e+01 : f32
    %132 = vector.broadcast %cst_60 : f32 to vector<16x1xf32>
    %133 = arith.divf %131, %132 : vector<16x1xf32>
    %134 = vector.broadcast %133 : vector<16x1xf32> to vector<16x32xf32>
    %135 = arith.subf %127, %134 : vector<16x32xf32>
    %136 = arith.mulf %135, %135 : vector<16x32xf32>
    %cst_61 = arith.constant dense<0.000000e+00> : vector<16xf32>
    %137 = vector.multi_reduction <add>, %136, %cst_61 [1] : vector<16x32xf32> to vector<16xf32>
    %138 = vector.shape_cast %137 : vector<16xf32> to vector<16x1xf32>
    %cst_62 = arith.constant 3.200000e+01 : f32
    %139 = vector.broadcast %cst_62 : f32 to vector<16x1xf32>
    %140 = arith.divf %138, %139 : vector<16x1xf32>
    %141 = vector.broadcast %133 : vector<16x1xf32> to vector<16x32xf32>
    %142 = arith.subf %127, %141 : vector<16x32xf32>
    %cst_63 = arith.constant 9.99999996E-13 : f32
    %143 = vector.broadcast %cst_63 : f32 to vector<16x1xf32>
    %144 = arith.addf %140, %143 : vector<16x1xf32>
    %145 = math.rsqrt %144 : vector<16x1xf32>
    %146 = vector.broadcast %145 : vector<16x1xf32> to vector<16x32xf32>
    %147 = arith.mulf %142, %146 : vector<16x32xf32>
    %148 = vector.broadcast %128 : vector<1x32xf32> to vector<16x32xf32>
    %149 = arith.mulf %147, %148 : vector<16x32xf32>
    %150 = vector.broadcast %129 : vector<1x32xf32> to vector<16x32xf32>
    %151 = arith.addf %149, %150 : vector<16x32xf32>
    %152 = arith.truncf %151 : vector<16x32xf32> to vector<16x32xbf16>
    %c0_64 = arith.constant 0 : index
    %c0_65 = arith.constant 0 : index
    %153 = vector.load %arg12[%c0_64, %c0_65] : memref<32x64xbf16, #tpu.memory_space<vmem>>, vector<32x64xbf16>
    %cst_66 = arith.constant dense<0.000000e+00> : vector<16x64xf32>
    %154 = tpu.matmul %152, %153, %cst_66 {dimension_numbers = #tpu.dot_dimension_numbers<[1], [0], [0], [1], [0, 0, 1, 1], [], []>} : vector<16x32xbf16>, vector<32x64xbf16>, vector<16x64xf32> -> vector<16x64xf32>
    %c0_67 = arith.constant 0 : index
    %c0_68 = arith.constant 0 : index
    %155 = vector.load %arg13[%c0_67, %c0_68] : memref<1x64xf32, #tpu.memory_space<vmem>>, vector<1x64xf32>
    %156 = vector.broadcast %155 : vector<1x64xf32> to vector<16x64xf32>
    %157 = arith.addf %154, %156 : vector<16x64xf32>
    %cst_69 = arith.constant 5.000000e-01 : f32
    %158 = vector.broadcast %cst_69 : f32 to vector<16x64xf32>
    %159 = arith.mulf %158, %157 : vector<16x64xf32>
    %cst_70 = arith.constant 4.471500e-02 : f32
    %160 = vector.broadcast %cst_70 : f32 to vector<16x64xf32>
    %161 = arith.mulf %160, %157 : vector<16x64xf32>
    %162 = arith.mulf %161, %157 : vector<16x64xf32>
    %163 = arith.mulf %162, %157 : vector<16x64xf32>
    %164 = arith.addf %157, %163 : vector<16x64xf32>
    %cst_71 = arith.constant 0.797884583 : f32
    %165 = vector.broadcast %cst_71 : f32 to vector<16x64xf32>
    %166 = arith.mulf %165, %164 : vector<16x64xf32>
    %167 = math.tanh %166 : vector<16x64xf32>
    %cst_72 = arith.constant 1.000000e+00 : f32
    %168 = vector.broadcast %cst_72 : f32 to vector<16x64xf32>
    %169 = arith.addf %168, %167 : vector<16x64xf32>
    %170 = arith.mulf %159, %169 : vector<16x64xf32>
    %171 = arith.truncf %170 : vector<16x64xf32> to vector<16x64xbf16>
    %c0_73 = arith.constant 0 : index
    %c0_74 = arith.constant 0 : index
    %172 = vector.load %arg14[%c0_73, %c0_74] : memref<64x32xbf16, #tpu.memory_space<vmem>>, vector<64x32xbf16>
    %cst_75 = arith.constant dense<0.000000e+00> : vector<16x32xf32>
    %173 = tpu.matmul %171, %172, %cst_75 {dimension_numbers = #tpu.dot_dimension_numbers<[1], [0], [0], [1], [0, 0, 1, 1], [], []>} : vector<16x64xbf16>, vector<64x32xbf16>, vector<16x32xf32> -> vector<16x32xf32>
    %c0_76 = arith.constant 0 : index
    %c0_77 = arith.constant 0 : index
    %174 = vector.load %arg15[%c0_76, %c0_77] : memref<1x32xf32, #tpu.memory_space<vmem>>, vector<1x32xf32>
    %175 = vector.broadcast %174 : vector<1x32xf32> to vector<16x32xf32>
    %176 = arith.addf %173, %175 : vector<16x32xf32>
    %177 = arith.addf %151, %176 : vector<16x32xf32>
    %c0_78 = arith.constant 0 : index
    %c0_79 = arith.constant 0 : index
    %178 = vector.load %arg16[%c0_78, %c0_79] : memref<1x32xf32, #tpu.memory_space<vmem>>, vector<1x32xf32>
    %c0_80 = arith.constant 0 : index
    %c0_81 = arith.constant 0 : index
    %179 = vector.load %arg17[%c0_80, %c0_81] : memref<1x32xf32, #tpu.memory_space<vmem>>, vector<1x32xf32>
    %cst_82 = arith.constant dense<0.000000e+00> : vector<16xf32>
    %180 = vector.multi_reduction <add>, %177, %cst_82 [1] : vector<16x32xf32> to vector<16xf32>
    %181 = vector.shape_cast %180 : vector<16xf32> to vector<16x1xf32>
    %cst_83 = arith.constant 3.200000e+01 : f32
    %182 = vector.broadcast %cst_83 : f32 to vector<16x1xf32>
    %183 = arith.divf %181, %182 : vector<16x1xf32>
    %184 = vector.broadcast %183 : vector<16x1xf32> to vector<16x32xf32>
    %185 = arith.subf %177, %184 : vector<16x32xf32>
    %186 = arith.mulf %185, %185 : vector<16x32xf32>
    %cst_84 = arith.constant dense<0.000000e+00> : vector<16xf32>
    %187 = vector.multi_reduction <add>, %186, %cst_84 [1] : vector<16x32xf32> to vector<16xf32>
    %188 = vector.shape_cast %187 : vector<16xf32> to vector<16x1xf32>
    %cst_85 = arith.constant 3.200000e+01 : f32
    %189 = vector.broadcast %cst_85 : f32 to vector<16x1xf32>
    %190 = arith.divf %188, %189 : vector<16x1xf32>
    %191 = vector.broadcast %183 : vector<16x1xf32> to vector<16x32xf32>
    %192 = arith.subf %177, %191 : vector<16x32xf32>
    %cst_86 = arith.constant 9.99999996E-13 : f32
    %193 = vector.broadcast %cst_86 : f32 to vector<16x1xf32>
    %194 = arith.addf %190, %193 : vector<16x1xf32>
    %195 = math.rsqrt %194 : vector<16x1xf32>
    %196 = vector.broadcast %195 : vector<16x1xf32> to vector<16x32xf32>
    %197 = arith.mulf %192, %196 : vector<16x32xf32>
    %198 = vector.broadcast %178 : vector<1x32xf32> to vector<16x32xf32>
    %199 = arith.mulf %197, %198 : vector<16x32xf32>
    %200 = vector.broadcast %179 : vector<1x32xf32> to vector<16x32xf32>
    %201 = arith.addf %199, %200 : vector<16x32xf32>
    %202 = arith.truncf %201 : vector<16x32xf32> to vector<16x32xbf16>
    %c0_87 = arith.constant 0 : index
    %c0_88 = arith.constant 0 : index
    %203 = vector.load %arg18[%c0_87, %c0_88] : memref<32x96xbf16, #tpu.memory_space<vmem>>, vector<32x96xbf16>
    %cst_89 = arith.constant dense<0.000000e+00> : vector<16x96xf32>
    %204 = tpu.matmul %202, %203, %cst_89 {dimension_numbers = #tpu.dot_dimension_numbers<[1], [0], [0], [1], [0, 0, 1, 1], [], []>} : vector<16x32xbf16>, vector<32x96xbf16>, vector<16x96xf32> -> vector<16x96xf32>
    %c0_90 = arith.constant 0 : index
    %c0_91 = arith.constant 0 : index
    %205 = vector.load %arg19[%c0_90, %c0_91] : memref<1x96xf32, #tpu.memory_space<vmem>>, vector<1x96xf32>
    %206 = vector.broadcast %205 : vector<1x96xf32> to vector<16x96xf32>
    %207 = arith.addf %204, %206 : vector<16x96xf32>
    %208 = vector.extract_strided_slice %207 {offsets = [0, 0], sizes = [16, 8], strides = [1, 1]} : vector<16x96xf32> to vector<16x8xf32>
    %209 = vector.extract_strided_slice %207 {offsets = [0, 32], sizes = [16, 8], strides = [1, 1]} : vector<16x96xf32> to vector<16x8xf32>
    %210 = vector.extract_strided_slice %207 {offsets = [0, 64], sizes = [16, 8], strides = [1, 1]} : vector<16x96xf32> to vector<16x8xf32>
    %211 = tpu.transpose %209, [1, 0] : vector<16x8xf32> -> vector<8x16xf32>
    %cst_92 = arith.constant dense<0.000000e+00> : vector<16x16xf32>
    %212 = tpu.matmul %208, %211, %cst_92 {dimension_numbers = #tpu.dot_dimension_numbers<[1], [0], [0], [1], [0, 0, 1, 1], [], []>} : vector<16x8xf32>, vector<8x16xf32>, vector<16x16xf32> -> vector<16x16xf32>
    %cst_93 = arith.constant 0.353553385 : f32
    %213 = vector.broadcast %cst_93 : f32 to vector<16x16xf32>
    %214 = arith.mulf %212, %213 : vector<16x16xf32>
    %215 = arith.addf %214, %33 : vector<16x16xf32>
    %cst_94 = arith.constant dense<0xFF800000> : vector<16xf32>
    %216 = vector.multi_reduction <maximumf>, %215, %cst_94 [1] : vector<16x16xf32> to vector<16xf32>
    %217 = vector.shape_cast %216 : vector<16xf32> to vector<16x1xf32>
    %218 = vector.broadcast %217 : vector<16x1xf32> to vector<16x16xf32>
    %219 = arith.subf %215, %218 : vector<16x16xf32>
    %220 = math.exp %219 : vector<16x16xf32>
    %cst_95 = arith.constant dense<0.000000e+00> : vector<16xf32>
    %221 = vector.multi_reduction <add>, %220, %cst_95 [1] : vector<16x16xf32> to vector<16xf32>
    %222 = vector.shape_cast %221 : vector<16xf32> to vector<16x1xf32>
    %223 = tpu.reciprocal %222 {approx = true} : vector<16x1xf32> -> vector<16x1xf32>
    %cst_96 = arith.constant dense<0.000000e+00> : vector<16x8xf32>
    %224 = tpu.matmul %220, %210, %cst_96 {dimension_numbers = #tpu.dot_dimension_numbers<[1], [0], [0], [1], [0, 0, 1, 1], [], []>} : vector<16x16xf32>, vector<16x8xf32>, vector<16x8xf32> -> vector<16x8xf32>
    %225 = vector.broadcast %223 : vector<16x1xf32> to vector<16x8xf32>
    %226 = arith.mulf %224, %225 : vector<16x8xf32>
    %c0_97 = arith.constant 0 : index
    %c0_98 = arith.constant 0 : index
    %227 = vector.load %arg35[%c0_97, %c0_98] : memref<16x32xf32, #tpu.memory_space<vmem>>, vector<16x8xf32>
    tpu.vector_store %arg35[%c0_97, %c0_98], %226 {strides = array<i32>} : memref<16x32xf32, #tpu.memory_space<vmem>>, vector<16x8xf32>,
    %228 = vector.extract_strided_slice %207 {offsets = [0, 8], sizes = [16, 8], strides = [1, 1]} : vector<16x96xf32> to vector<16x8xf32>
    %229 = vector.extract_strided_slice %207 {offsets = [0, 40], sizes = [16, 8], strides = [1, 1]} : vector<16x96xf32> to vector<16x8xf32>
    %230 = vector.extract_strided_slice %207 {offsets = [0, 72], sizes = [16, 8], strides = [1, 1]} : vector<16x96xf32> to vector<16x8xf32>
    %231 = tpu.transpose %229, [1, 0] : vector<16x8xf32> -> vector<8x16xf32>
    %cst_99 = arith.constant dense<0.000000e+00> : vector<16x16xf32>
    %232 = tpu.matmul %228, %231, %cst_99 {dimension_numbers = #tpu.dot_dimension_numbers<[1], [0], [0], [1], [0, 0, 1, 1], [], []>} : vector<16x8xf32>, vector<8x16xf32>, vector<16x16xf32> -> vector<16x16xf32>
    %cst_100 = arith.constant 0.353553385 : f32
    %233 = vector.broadcast %cst_100 : f32 to vector<16x16xf32>
    %234 = arith.mulf %232, %233 : vector<16x16xf32>
    %235 = arith.addf %234, %33 : vector<16x16xf32>
    %cst_101 = arith.constant dense<0xFF800000> : vector<16xf32>
    %236 = vector.multi_reduction <maximumf>, %235, %cst_101 [1] : vector<16x16xf32> to vector<16xf32>
    %237 = vector.shape_cast %236 : vector<16xf32> to vector<16x1xf32>
    %238 = vector.broadcast %237 : vector<16x1xf32> to vector<16x16xf32>
    %239 = arith.subf %235, %238 : vector<16x16xf32>
    %240 = math.exp %239 : vector<16x16xf32>
    %cst_102 = arith.constant dense<0.000000e+00> : vector<16xf32>
    %241 = vector.multi_reduction <add>, %240, %cst_102 [1] : vector<16x16xf32> to vector<16xf32>
    %242 = vector.shape_cast %241 : vector<16xf32> to vector<16x1xf32>
    %243 = tpu.reciprocal %242 {approx = true} : vector<16x1xf32> -> vector<16x1xf32>
    %cst_103 = arith.constant dense<0.000000e+00> : vector<16x8xf32>
    %244 = tpu.matmul %240, %230, %cst_103 {dimension_numbers = #tpu.dot_dimension_numbers<[1], [0], [0], [1], [0, 0, 1, 1], [], []>} : vector<16x16xf32>, vector<16x8xf32>, vector<16x8xf32> -> vector<16x8xf32>
    %245 = vector.broadcast %243 : vector<16x1xf32> to vector<16x8xf32>
    %246 = arith.mulf %244, %245 : vector<16x8xf32>
    %c0_104 = arith.constant 0 : index
    %c8_105 = arith.constant 8 : index
    %247 = vector.load %arg35[%c0_104, %c8_105] : memref<16x32xf32, #tpu.memory_space<vmem>>, vector<16x8xf32>
    tpu.vector_store %arg35[%c0_104, %c8_105], %246 {strides = array<i32>} : memref<16x32xf32, #tpu.memory_space<vmem>>, vector<16x8xf32>,
    %248 = vector.extract_strided_slice %207 {offsets = [0, 16], sizes = [16, 8], strides = [1, 1]} : vector<16x96xf32> to vector<16x8xf32>
    %249 = vector.extract_strided_slice %207 {offsets = [0, 48], sizes = [16, 8], strides = [1, 1]} : vector<16x96xf32> to vector<16x8xf32>
    %250 = vector.extract_strided_slice %207 {offsets = [0, 80], sizes = [16, 8], strides = [1, 1]} : vector<16x96xf32> to vector<16x8xf32>
    %251 = tpu.transpose %249, [1, 0] : vector<16x8xf32> -> vector<8x16xf32>
    %cst_106 = arith.constant dense<0.000000e+00> : vector<16x16xf32>
    %252 = tpu.matmul %248, %251, %cst_106 {dimension_numbers = #tpu.dot_dimension_numbers<[1], [0], [0], [1], [0, 0, 1, 1], [], []>} : vector<16x8xf32>, vector<8x16xf32>, vector<16x16xf32> -> vector<16x16xf32>
    %cst_107 = arith.constant 0.353553385 : f32
    %253 = vector.broadcast %cst_107 : f32 to vector<16x16xf32>
    %254 = arith.mulf %252, %253 : vector<16x16xf32>
    %255 = arith.addf %254, %33 : vector<16x16xf32>
    %cst_108 = arith.constant dense<0xFF800000> : vector<16xf32>
    %256 = vector.multi_reduction <maximumf>, %255, %cst_108 [1] : vector<16x16xf32> to vector<16xf32>
    %257 = vector.shape_cast %256 : vector<16xf32> to vector<16x1xf32>
    %258 = vector.broadcast %257 : vector<16x1xf32> to vector<16x16xf32>
    %259 = arith.subf %255, %258 : vector<16x16xf32>
    %260 = math.exp %259 : vector<16x16xf32>
    %cst_109 = arith.constant dense<0.000000e+00> : vector<16xf32>
    %261 = vector.multi_reduction <add>, %260, %cst_109 [1] : vector<16x16xf32> to vector<16xf32>
    %262 = vector.shape_cast %261 : vector<16xf32> to vector<16x1xf32>
    %263 = tpu.reciprocal %262 {approx = true} : vector<16x1xf32> -> vector<16x1xf32>
    %cst_110 = arith.constant dense<0.000000e+00> : vector<16x8xf32>
    %264 = tpu.matmul %260, %250, %cst_110 {dimension_numbers = #tpu.dot_dimension_numbers<[1], [0], [0], [1], [0, 0, 1, 1], [], []>} : vector<16x16xf32>, vector<16x8xf32>, vector<16x8xf32> -> vector<16x8xf32>
    %265 = vector.broadcast %263 : vector<16x1xf32> to vector<16x8xf32>
    %266 = arith.mulf %264, %265 : vector<16x8xf32>
    %c0_111 = arith.constant 0 : index
    %c16_112 = arith.constant 16 : index
    %267 = vector.load %arg35[%c0_111, %c16_112] : memref<16x32xf32, #tpu.memory_space<vmem>>, vector<16x8xf32>
    tpu.vector_store %arg35[%c0_111, %c16_112], %266 {strides = array<i32>} : memref<16x32xf32, #tpu.memory_space<vmem>>, vector<16x8xf32>,
    %268 = vector.extract_strided_slice %207 {offsets = [0, 24], sizes = [16, 8], strides = [1, 1]} : vector<16x96xf32> to vector<16x8xf32>
    %269 = vector.extract_strided_slice %207 {offsets = [0, 56], sizes = [16, 8], strides = [1, 1]} : vector<16x96xf32> to vector<16x8xf32>
    %270 = vector.extract_strided_slice %207 {offsets = [0, 88], sizes = [16, 8], strides = [1, 1]} : vector<16x96xf32> to vector<16x8xf32>
    %271 = tpu.transpose %269, [1, 0] : vector<16x8xf32> -> vector<8x16xf32>
    %cst_113 = arith.constant dense<0.000000e+00> : vector<16x16xf32>
    %272 = tpu.matmul %268, %271, %cst_113 {dimension_numbers = #tpu.dot_dimension_numbers<[1], [0], [0], [1], [0, 0, 1, 1], [], []>} : vector<16x8xf32>, vector<8x16xf32>, vector<16x16xf32> -> vector<16x16xf32>
    %cst_114 = arith.constant 0.353553385 : f32
    %273 = vector.broadcast %cst_114 : f32 to vector<16x16xf32>
    %274 = arith.mulf %272, %273 : vector<16x16xf32>
    %275 = arith.addf %274, %33 : vector<16x16xf32>
    %cst_115 = arith.constant dense<0xFF800000> : vector<16xf32>
    %276 = vector.multi_reduction <maximumf>, %275, %cst_115 [1] : vector<16x16xf32> to vector<16xf32>
    %277 = vector.shape_cast %276 : vector<16xf32> to vector<16x1xf32>
    %278 = vector.broadcast %277 : vector<16x1xf32> to vector<16x16xf32>
    %279 = arith.subf %275, %278 : vector<16x16xf32>
    %280 = math.exp %279 : vector<16x16xf32>
    %cst_116 = arith.constant dense<0.000000e+00> : vector<16xf32>
    %281 = vector.multi_reduction <add>, %280, %cst_116 [1] : vector<16x16xf32> to vector<16xf32>
    %282 = vector.shape_cast %281 : vector<16xf32> to vector<16x1xf32>
    %283 = tpu.reciprocal %282 {approx = true} : vector<16x1xf32> -> vector<16x1xf32>
    %cst_117 = arith.constant dense<0.000000e+00> : vector<16x8xf32>
    %284 = tpu.matmul %280, %270, %cst_117 {dimension_numbers = #tpu.dot_dimension_numbers<[1], [0], [0], [1], [0, 0, 1, 1], [], []>} : vector<16x16xf32>, vector<16x8xf32>, vector<16x8xf32> -> vector<16x8xf32>
    %285 = vector.broadcast %283 : vector<16x1xf32> to vector<16x8xf32>
    %286 = arith.mulf %284, %285 : vector<16x8xf32>
    %c0_118 = arith.constant 0 : index
    %c24_119 = arith.constant 24 : index
    %287 = vector.load %arg35[%c0_118, %c24_119] : memref<16x32xf32, #tpu.memory_space<vmem>>, vector<16x8xf32>
    tpu.vector_store %arg35[%c0_118, %c24_119], %286 {strides = array<i32>} : memref<16x32xf32, #tpu.memory_space<vmem>>, vector<16x8xf32>,
    %c0_120 = arith.constant 0 : index
    %c0_121 = arith.constant 0 : index
    %288 = vector.load %arg35[%c0_120, %c0_121] : memref<16x32xf32, #tpu.memory_space<vmem>>, vector<16x32xf32>
    %289 = arith.truncf %288 : vector<16x32xf32> to vector<16x32xbf16>
    %c0_122 = arith.constant 0 : index
    %c0_123 = arith.constant 0 : index
    %290 = vector.load %arg20[%c0_122, %c0_123] : memref<32x32xbf16, #tpu.memory_space<vmem>>, vector<32x32xbf16>
    %cst_124 = arith.constant dense<0.000000e+00> : vector<16x32xf32>
    %291 = tpu.matmul %289, %290, %cst_124 {dimension_numbers = #tpu.dot_dimension_numbers<[1], [0], [0], [1], [0, 0, 1, 1], [], []>} : vector<16x32xbf16>, vector<32x32xbf16>, vector<16x32xf32> -> vector<16x32xf32>
    %c0_125 = arith.constant 0 : index
    %c0_126 = arith.constant 0 : index
    %292 = vector.load %arg21[%c0_125, %c0_126] : memref<1x32xf32, #tpu.memory_space<vmem>>, vector<1x32xf32>
    %293 = vector.broadcast %292 : vector<1x32xf32> to vector<16x32xf32>
    %294 = arith.addf %291, %293 : vector<16x32xf32>
    %295 = arith.addf %201, %294 : vector<16x32xf32>
    %c0_127 = arith.constant 0 : index
    %c0_128 = arith.constant 0 : index
    %296 = vector.load %arg22[%c0_127, %c0_128] : memref<1x32xf32, #tpu.memory_space<vmem>>, vector<1x32xf32>
    %c0_129 = arith.constant 0 : index
    %c0_130 = arith.constant 0 : index
    %297 = vector.load %arg23[%c0_129, %c0_130] : memref<1x32xf32, #tpu.memory_space<vmem>>, vector<1x32xf32>
    %cst_131 = arith.constant dense<0.000000e+00> : vector<16xf32>
    %298 = vector.multi_reduction <add>, %295, %cst_131 [1] : vector<16x32xf32> to vector<16xf32>
    %299 = vector.shape_cast %298 : vector<16xf32> to vector<16x1xf32>
    %cst_132 = arith.constant 3.200000e+01 : f32
    %300 = vector.broadcast %cst_132 : f32 to vector<16x1xf32>
    %301 = arith.divf %299, %300 : vector<16x1xf32>
    %302 = vector.broadcast %301 : vector<16x1xf32> to vector<16x32xf32>
    %303 = arith.subf %295, %302 : vector<16x32xf32>
    %304 = arith.mulf %303, %303 : vector<16x32xf32>
    %cst_133 = arith.constant dense<0.000000e+00> : vector<16xf32>
    %305 = vector.multi_reduction <add>, %304, %cst_133 [1] : vector<16x32xf32> to vector<16xf32>
    %306 = vector.shape_cast %305 : vector<16xf32> to vector<16x1xf32>
    %cst_134 = arith.constant 3.200000e+01 : f32
    %307 = vector.broadcast %cst_134 : f32 to vector<16x1xf32>
    %308 = arith.divf %306, %307 : vector<16x1xf32>
    %309 = vector.broadcast %301 : vector<16x1xf32> to vector<16x32xf32>
    %310 = arith.subf %295, %309 : vector<16x32xf32>
    %cst_135 = arith.constant 9.99999996E-13 : f32
    %311 = vector.broadcast %cst_135 : f32 to vector<16x1xf32>
    %312 = arith.addf %308, %311 : vector<16x1xf32>
    %313 = math.rsqrt %312 : vector<16x1xf32>
    %314 = vector.broadcast %313 : vector<16x1xf32> to vector<16x32xf32>
    %315 = arith.mulf %310, %314 : vector<16x32xf32>
    %316 = vector.broadcast %296 : vector<1x32xf32> to vector<16x32xf32>
    %317 = arith.mulf %315, %316 : vector<16x32xf32>
    %318 = vector.broadcast %297 : vector<1x32xf32> to vector<16x32xf32>
    %319 = arith.addf %317, %318 : vector<16x32xf32>
    %320 = arith.truncf %319 : vector<16x32xf32> to vector<16x32xbf16>
    %c0_136 = arith.constant 0 : index
    %c0_137 = arith.constant 0 : index
    %321 = vector.load %arg24[%c0_136, %c0_137] : memref<32x64xbf16, #tpu.memory_space<vmem>>, vector<32x64xbf16>
    %cst_138 = arith.constant dense<0.000000e+00> : vector<16x64xf32>
    %322 = tpu.matmul %320, %321, %cst_138 {dimension_numbers = #tpu.dot_dimension_numbers<[1], [0], [0], [1], [0, 0, 1, 1], [], []>} : vector<16x32xbf16>, vector<32x64xbf16>, vector<16x64xf32> -> vector<16x64xf32>
    %c0_139 = arith.constant 0 : index
    %c0_140 = arith.constant 0 : index
    %323 = vector.load %arg25[%c0_139, %c0_140] : memref<1x64xf32, #tpu.memory_space<vmem>>, vector<1x64xf32>
    %324 = vector.broadcast %323 : vector<1x64xf32> to vector<16x64xf32>
    %325 = arith.addf %322, %324 : vector<16x64xf32>
    %cst_141 = arith.constant 5.000000e-01 : f32
    %326 = vector.broadcast %cst_141 : f32 to vector<16x64xf32>
    %327 = arith.mulf %326, %325 : vector<16x64xf32>
    %cst_142 = arith.constant 4.471500e-02 : f32
    %328 = vector.broadcast %cst_142 : f32 to vector<16x64xf32>
    %329 = arith.mulf %328, %325 : vector<16x64xf32>
    %330 = arith.mulf %329, %325 : vector<16x64xf32>
    %331 = arith.mulf %330, %325 : vector<16x64xf32>
    %332 = arith.addf %325, %331 : vector<16x64xf32>
    %cst_143 = arith.constant 0.797884583 : f32
    %333 = vector.broadcast %cst_143 : f32 to vector<16x64xf32>
    %334 = arith.mulf %333, %332 : vector<16x64xf32>
    %335 = math.tanh %334 : vector<16x64xf32>
    %cst_144 = arith.constant 1.000000e+00 : f32
    %336 = vector.broadcast %cst_144 : f32 to vector<16x64xf32>
    %337 = arith.addf %336, %335 : vector<16x64xf32>
    %338 = arith.mulf %327, %337 : vector<16x64xf32>
    %339 = arith.truncf %338 : vector<16x64xf32> to vector<16x64xbf16>
    %c0_145 = arith.constant 0 : index
    %c0_146 = arith.constant 0 : index
    %340 = vector.load %arg26[%c0_145, %c0_146] : memref<64x32xbf16, #tpu.memory_space<vmem>>, vector<64x32xbf16>
    %cst_147 = arith.constant dense<0.000000e+00> : vector<16x32xf32>
    %341 = tpu.matmul %339, %340, %cst_147 {dimension_numbers = #tpu.dot_dimension_numbers<[1], [0], [0], [1], [0, 0, 1, 1], [], []>} : vector<16x64xbf16>, vector<64x32xbf16>, vector<16x32xf32> -> vector<16x32xf32>
    %c0_148 = arith.constant 0 : index
    %c0_149 = arith.constant 0 : index
    %342 = vector.load %arg27[%c0_148, %c0_149] : memref<1x32xf32, #tpu.memory_space<vmem>>, vector<1x32xf32>
    %343 = vector.broadcast %342 : vector<1x32xf32> to vector<16x32xf32>
    %344 = arith.addf %341, %343 : vector<16x32xf32>
    %345 = arith.addf %319, %344 : vector<16x32xf32>
    %c0_150 = arith.constant 0 : index
    %c0_151 = arith.constant 0 : index
    %346 = vector.load %arg28[%c0_150, %c0_151] : memref<1x32xf32, #tpu.memory_space<vmem>>, vector<1x32xf32>
    %c0_152 = arith.constant 0 : index
    %c0_153 = arith.constant 0 : index
    %347 = vector.load %arg29[%c0_152, %c0_153] : memref<1x32xf32, #tpu.memory_space<vmem>>, vector<1x32xf32>
    %cst_154 = arith.constant dense<0.000000e+00> : vector<16xf32>
    %348 = vector.multi_reduction <add>, %345, %cst_154 [1] : vector<16x32xf32> to vector<16xf32>
    %349 = vector.shape_cast %348 : vector<16xf32> to vector<16x1xf32>
    %cst_155 = arith.constant 3.200000e+01 : f32
    %350 = vector.broadcast %cst_155 : f32 to vector<16x1xf32>
    %351 = arith.divf %349, %350 : vector<16x1xf32>
    %352 = vector.broadcast %351 : vector<16x1xf32> to vector<16x32xf32>
    %353 = arith.subf %345, %352 : vector<16x32xf32>
    %354 = arith.mulf %353, %353 : vector<16x32xf32>
    %cst_156 = arith.constant dense<0.000000e+00> : vector<16xf32>
    %355 = vector.multi_reduction <add>, %354, %cst_156 [1] : vector<16x32xf32> to vector<16xf32>
    %356 = vector.shape_cast %355 : vector<16xf32> to vector<16x1xf32>
    %cst_157 = arith.constant 3.200000e+01 : f32
    %357 = vector.broadcast %cst_157 : f32 to vector<16x1xf32>
    %358 = arith.divf %356, %357 : vector<16x1xf32>
    %359 = vector.broadcast %351 : vector<16x1xf32> to vector<16x32xf32>
    %360 = arith.subf %345, %359 : vector<16x32xf32>
    %cst_158 = arith.constant 9.99999996E-13 : f32
    %361 = vector.broadcast %cst_158 : f32 to vector<16x1xf32>
    %362 = arith.addf %358, %361 : vector<16x1xf32>
    %363 = math.rsqrt %362 : vector<16x1xf32>
    %364 = vector.broadcast %363 : vector<16x1xf32> to vector<16x32xf32>
    %365 = arith.mulf %360, %364 : vector<16x32xf32>
    %366 = vector.broadcast %346 : vector<1x32xf32> to vector<16x32xf32>
    %367 = arith.mulf %365, %366 : vector<16x32xf32>
    %368 = vector.broadcast %347 : vector<1x32xf32> to vector<16x32xf32>
    %369 = arith.addf %367, %368 : vector<16x32xf32>
    %370 = vector.shape_cast %369 : vector<16x32xf32> to vector<2x8x32xf32>
    %371 = vector.extract_strided_slice %370 {offsets = [0, 0, 0], sizes = [2, 1, 32], strides = [1, 1, 1]} : vector<2x8x32xf32> to vector<2x1x32xf32>
    %372 = vector.shape_cast %371 : vector<2x1x32xf32> to vector<2x32xf32>
    %373 = arith.truncf %372 : vector<2x32xf32> to vector<2x32xbf16>
    %c0_159 = arith.constant 0 : index
    %c0_160 = arith.constant 0 : index
    %374 = vector.load %arg30[%c0_159, %c0_160] : memref<32x32xbf16, #tpu.memory_space<vmem>>, vector<32x32xbf16>
    %cst_161 = arith.constant dense<0.000000e+00> : vector<2x32xf32>
    %375 = tpu.matmul %373, %374, %cst_161 {dimension_numbers = #tpu.dot_dimension_numbers<[1], [0], [0], [1], [0, 0, 1, 1], [], []>} : vector<2x32xbf16>, vector<32x32xbf16>, vector<2x32xf32> -> vector<2x32xf32>
    %c0_162 = arith.constant 0 : index
    %c0_163 = arith.constant 0 : index
    %376 = vector.load %arg31[%c0_162, %c0_163] : memref<1x32xf32, #tpu.memory_space<vmem>>, vector<1x32xf32>
    %377 = vector.broadcast %376 : vector<1x32xf32> to vector<2x32xf32>
    %378 = arith.addf %375, %377 : vector<2x32xf32>
    %379 = math.tanh %378 : vector<2x32xf32>
    %380 = arith.truncf %379 : vector<2x32xf32> to vector<2x32xbf16>
    %c0_164 = arith.constant 0 : index
    %c0_165 = arith.constant 0 : index
    %381 = vector.load %arg32[%c0_164, %c0_165] : memref<32x5xbf16, #tpu.memory_space<vmem>>, vector<32x5xbf16>
    %cst_166 = arith.constant dense<0.000000e+00> : vector<2x5xf32>
    %382 = tpu.matmul %380, %381, %cst_166 {dimension_numbers = #tpu.dot_dimension_numbers<[1], [0], [0], [1], [0, 0, 1, 1], [], []>} : vector<2x32xbf16>, vector<32x5xbf16>, vector<2x5xf32> -> vector<2x5xf32>
    %c0_167 = arith.constant 0 : index
    %c0_168 = arith.constant 0 : index
    %383 = vector.load %arg33[%c0_167, %c0_168] : memref<1x5xf32, #tpu.memory_space<vmem>>, vector<1x5xf32>
    %384 = vector.broadcast %383 : vector<1x5xf32> to vector<2x5xf32>
    %385 = arith.addf %382, %384 : vector<2x5xf32>
    %c0_169 = arith.constant 0 : index
    %c0_170 = arith.constant 0 : index
    %386 = vector.load %arg34[%c0_169, %c0_170] : memref<2x5xf32, #tpu.memory_space<vmem>>, vector<2x5xf32>
    tpu.vector_store %arg34[%c0_169, %c0_170], %385 {strides = array<i32>} : memref<2x5xf32, #tpu.memory_space<vmem>>, vector<2x5xf32>,
    return
  }
}

</mosaic_0001>

<bundles_post_ra>
// kernel: bert_forward.1
= control target key start
LH: loop header
LB: loop body
LE: loop exit
PB: predicated region body
PF: predicated region fallthrough
CT: control target
= control target key end

     0   :  { %s3648_s6 = smov 1   ;;  %s3649_s10 = smov 2   ;;  %s4296_s0 = inlined_call_operand.smem [shape: u32[35], index: -1, kind: input, shape index: {}] }
   0x1   :  { %s3707_s5 = sld [smem:[%s4296_s0]]   ;;  %s3650_s14 = smov 3  }
   0x2   :  { %s3712_s9 = sld [smem:[%s4296_s0 + %s3648_s6]]   ;;  %s3651_s18 = smov 4  }
   0x3   :  { %s3717_s13 = sld [smem:[%s4296_s0 + %s3649_s10]]   ;;  %s3652_s22 = smov 5  }
   0x4   :  { %s3722_s17 = sld [smem:[%s4296_s0 + %s3650_s14]]   ;;  %s3653_s26 = smov 6  }
   0x5   :  { %s3727_s21 = sld [smem:[%s4296_s0 + %s3651_s18]]   ;;  %s3654_s30 = smov 7  }
   0x6   :  { %s3732_s25 = sld [smem:[%s4296_s0 + %s3652_s22]]   ;;  %s3655_s4 = smov 8  }
   0x7   :  { %s3737_s29 = sld [smem:[%s4296_s0 + %s3653_s26]]   ;;  %s3656_s10 = smov 9  }
   0x8   :  { %s3742_s3 = sld [smem:[%s4296_s0 + %s3654_s30]]   ;;  %s3657_s15 = smov 10  }
   0x9   :  { %s3747_s8 = sld [smem:[%s4296_s0 + %s3655_s4]]   ;;  %s3658_s20 = smov 11  }
   0xa   :  { %s3752_s14 = sld [smem:[%s4296_s0 + %s3656_s10]]   ;;  %s3659_s26 = smov 12  }
   0xb   :  { %s3757_s19 = sld [smem:[%s4296_s0 + %s3657_s15]]   ;;  %s3660_s1 = smov 13  }
   0xc   :  { %s3762_s24 = sld [smem:[%s4296_s0 + %s3658_s20]]   ;;  %s3661_s7 = smov 14  }
   0xd   :  { %s3767_s30 = sld [smem:[%s4296_s0 + %s3659_s26]]   ;;  %s3662_s15 = smov 15  }
   0xe   :  { %s3772_s6 = sld [smem:[%s4296_s0 + %s3660_s1]]   ;;  %s3663_s22 = smov 16  }
   0xf   :  { %s3777_s12 = sld [smem:[%s4296_s0 + %s3661_s7]]   ;;  %s3664_s28 = smov 17  }
  0x10   :  { %s3782_s20 = sld [smem:[%s4296_s0 + %s3662_s15]]   ;;  %s3665_s7 = smov 18  }
  0x11   :  { %s3787_s27 = sld [smem:[%s4296_s0 + %s3663_s22]]   ;;  %s3666_s15 = smov 19  }
  0x12   :  { %s3792_s4 = sld [smem:[%s4296_s0 + %s3664_s28]]   ;;  %s3667_s22 = smov 20  }
  0x13   :  { %s3668_s28 = smov 21  }
  0x14   :  { %4302 = sst [smem:[#allocation6_spill]] %s3772_s6 }
  0x15   :  { %s3797_s6 = sld [smem:[%s4296_s0 + %s3665_s7]]   ;;  %s3669_s7 = smov 22  }
  0x16   :  { %4303 = sst [smem:[#allocation7_spill]] %s3782_s20 }
  0x17   :  { %4304 = sst [smem:[#allocation8_spill]] %s3787_s27 }
  0x18   :  { %4305 = sst [smem:[#allocation9_spill]] %s3792_s4 }
  0x19   :  { %s3802_s20 = sld [smem:[%s4296_s0 + %s3666_s15]]   ;;  %s3670_s15 = smov 23  }
  0x1a   :  { %s3807_s27 = sld [smem:[%s4296_s0 + %s3667_s22]]   ;;  %s3671_s22 = smov 24  }
  0x1b   :  { %4306 = sst [smem:[#allocation10_spill]] %s3797_s6 }
  0x1c   :  { %s3812_s4 = sld [smem:[%s4296_s0 + %s3668_s28]]   ;;  %s3672_s28 = smov 25  }
  0x1d   :  { %s3817_s6 = sld [smem:[%s4296_s0 + %s3669_s7]]   ;;  %s3673_s7 = smov 26  }
  0x1f   :  { %4307 = sst [smem:[#allocation11_spill]] %s3802_s20 }
  0x20   :  { %4308 = sst [smem:[#allocation12_spill]] %s3807_s27 }
  0x21   :  { %s3822_s20 = sld [smem:[%s4296_s0 + %s3670_s15]]   ;;  %s3674_s15 = smov 27  }
  0x22   :  { %4309 = sst [smem:[#allocation13_spill]] %s3812_s4 }
  0x23   :  { %4310 = sst [smem:[#allocation14_spill]] %s3817_s6 }
  0x24   :  { %s3827_s27 = sld [smem:[%s4296_s0 + %s3671_s22]]   ;;  %s3675_s22 = smov 28  }
  0x25   :  { %s3832_s4 = sld [smem:[%s4296_s0 + %s3672_s28]]   ;;  %s3676_s28 = smov 29  }
  0x26   :  { %s3837_s6 = sld [smem:[%s4296_s0 + %s3673_s7]]   ;;  %s3677_s7 = smov 30  }
  0x27   :  { %4311 = sst [smem:[#allocation15_spill]] %s3822_s20 }
  0x28   :  { %s3842_s20 = sld [smem:[%s4296_s0 + %s3674_s15]]   ;;  %s3678_s15 = smov 31  }
  0x2a   :  { %4312 = sst [smem:[#allocation16_spill]] %s3827_s27 }
  0x2b   :  { %4313 = sst [smem:[#allocation17_spill]] %s3832_s4 }
  0x2c   :  { %4314 = sst [smem:[#allocation18_spill]] %s3837_s6 }
  0x2d   :  { %s3847_s27 = sld [smem:[%s4296_s0 + %s3675_s22]]   ;;  %s3679_s22 = smov 32  }
  0x2e   :  { %4315 = sst [smem:[#allocation19_spill]] %s3842_s20 }
  0x2f   :  { %s3852_s4 = sld [smem:[%s4296_s0 + %s3676_s28]]   ;;  %s3680_s28 = smov 33  }
  0x30   :  { %s3857_s6 = sld [smem:[%s4296_s0 + %s3677_s7]]   ;;  %s3681_s7 = smov 34  }
  0x31   :  { %s3862_s20 = sld [smem:[%s4296_s0 + %s3678_s15]]  }
  0x33   :  { %4316 = sst [smem:[#allocation20_spill]] %s3847_s27 }
  0x34   :  { %s3867_s27 = sld [smem:[%s4296_s0 + %s3679_s22]]  }
  0x35   :  { %4317 = sst [smem:[#allocation21_spill]] %s3852_s4 }
  0x36   :  { %4318 = sst [smem:[#allocation22_spill]] %s3857_s6 }
  0x37   :  { %s3872_s4 = sld [smem:[%s4296_s0 + %s3680_s28]]  }
  0x38   :  { %s3877_s6 = sld [smem:[%s4296_s0 + %s3681_s7]]  }
  0x39   :  { %v144_v0 = vld [vmem:[%s3707_s5] sm:$0xff]  ;;  %vm155_vm0 = vcmask 261120   ;;  %v145_v4 = vld [vmem:[%s3707_s5 + $0x8] sm:$0xff] }
  0x3a   :  { %v146_v1 = vld [vmem:[%s3712_s9] sm:$0xff]  ;;  %v150_v5 = vld [vmem:[%s3717_s13 + $0x8] sm:$0xff] }
  0x3b   :  { %v149_v2 = vld [vmem:[%s3717_s13] sm:$0xff]  ;;  %v147_v3 = vadd.f32 %v146_v1, %v144_v0  ;;  %v148_v6 = vadd.f32 %v146_v1, %v145_v4 }
  0x3d   :  { %v151_v7 = vadd.f32 %v149_v2, %v147_v3  ;;  %v152_v8 = vadd.f32 %v150_v5, %v148_v6 }
  0x3f   :  { %v156_v9 = vsel %vm155_vm0, %v151_v7, 0.0  ;;  %v159_v10 = vsel %vm155_vm0, %v152_v8, 0.0 }
  0x40   :  { %157 = vadd.xlane.f32.xlu0 %v156_v9 }
  0x44   :  { %160 = vadd.xlane.f32.xlu0 %v159_v10 }
  0x45   :  { %74 = vsyncpa [#allocation4], 0  ;;  %v3504_v21 = vld [vmem:[%s3737_s29] sm:$0xff]   ;;  %v3682_v22 = vmov 0.0   ;;  %vm3683_vm1 = vmmov 0   ;;  %v3505_v23 = vld [vmem:[%s3737_s29 + $0x8] sm:$0xff]  }
  0x46   :  { %3093 = vmatprep.subr.bf16.mxu0 %v3682_v22  ;;  %3097 = vmatprep.mubr.msk.bf16.mxu0 %vm3683_vm1, %v3682_v22  ;;  %v2893_v32 = vld [vmem:[%s3727_s21] ss:$0 sm:$0xff]  ;;  %vm275_vm2 = vcmask 64512   ;;  %s3684_s0 = smov 88   ;;  %s3685_s5 = smov 96   ;;  %vm363_vm4 = vcmask 130048  }
  0x47   :  { %3094 = vmatpush3.bf16.msra.mxu0 %v3504_v21  ;;  %v2894_v36 = vld [vmem:[%s3732_s25] ss:$0 sm:$0xff]  ;;  %s3686_s9 = smov 120   ;;  %s3687_s13 = smov 80   ;;  %vm3932_vm3 = vmpackc.low %vm275_vm2, %vm275_vm2  ;;  %vm687_vm5 = vcmask 130112   ;;  %vm902_vm6 = vcmask 195712  }
  0x48   :  { %3095 = vmatprep.subr.bf16.mxu0 %v3682_v22  ;;  %v2895_v41 = vld [vmem:[%s3742_s3] ss:$0 sm:$0xff]  ;;  %s3688_s21 = smov 112   ;;  %s3689_s25 = smov 64   ;;  %vm1117_vm7 = vcmask 261312   ;;  %vm1362_vm8 = vcmask 523264  }
  0x49   :  { %s3690_s29 = smov 48   ;;  %s3691_s3 = smov 72   ;;  %vm2717_vm9 = vcmask 1041409   ;;  %vm2843_vm10 = vcmask 33792  }
  0x4a   :  { %s3692_s15 = smov 56   ;;  %s3693_s16 = smov 104  }
  0x4b   :  { %3096 = vmatpush3.bf16.msra.mxu0 %v3505_v23  ;;  %s3694_s18 = smov 40   ;;  %s3695_s22 = smov 16  }
  0x4c   :  { %s3696_s23 = smov 8   ;;  %s3697_s26 = smov 24  }
  0x4d   :  { %s4328_s28 = sld [smem:[#allocation13_spill]]  ;;  %s4329_s1 = sld [smem:[#allocation16_spill]] }
  0x4e   :  { %s4330_s2 = sld [smem:[#allocation14_spill]]  ;;  %s4331_s7 = sld [smem:[#allocation15_spill]] }
  0x4f   :  { %s4332_s10 = sld [smem:[#allocation18_spill]]  ;;  %s4333_s11 = sld [smem:[#allocation17_spill]] }
  0xcd   :  { %v158_v11 = vpop.xlane.xlu0 %157 }
  0xce   :  { %v163_v12 = vmul.f32 0.03125, %v158_v11  ;;  %v3958_v11 = vld [vmem:[%s3722_s17] sm:$0xff] }
  0xd0   :  { %v165_v13 = vsub.f32 %v151_v7, %v163_v12  ;;  %v3955_v7 = vld [vmem:[%s3722_s17 + $0x8] sm:$0xff] }
  0xd1   :  { %v161_v14 = vpop.xlane.xlu0 %160 }
  0xd2   :  { %v164_v15 = vmul.f32 0.03125, %v161_v14  ;;  %v167_v16 = vmul.f32 %v165_v13, %v165_v13 }
  0xd4   :  { %v166_v17 = vsub.f32 %v152_v8, %v164_v15  ;;  %v169_v18 = vsel %vm155_vm0, %v167_v16, 0.0 }
  0xd5   :  { %170 = vadd.xlane.f32.xlu1 %v169_v18 }
  0xd6   :  { %v168_v19 = vmul.f32 %v166_v17, %v166_v17 }
  0xd8   :  { %v172_v20 = vsel %vm155_vm0, %v168_v19, 0.0 }
  0xd9   :  { %173 = vadd.xlane.f32.xlu1 %v172_v20 }
 0x162   :  { %v171_v24 = vpop.xlane.xlu1 %170 }
 0x163   :  { %v175_v25 = vmul.f32 0.03125, %v171_v24 }
 0x165   :  { %v177_v26 = vadd.f32 1e-12, %v175_v25 }
 0x166   :  { %v174_v27 = vpop.xlane.xlu1 %173 }
 0x167   :  { %3528 = vrsqrt.f32 %v177_v26  ;;  %v176_v28 = vmul.f32 0.03125, %v174_v27 }
 0x169   :  { %v178_v29 = vadd.f32 1e-12, %v176_v28 }
 0x16b   :  { %3530 = vrsqrt.f32 %v178_v29 }
 0x171   :  { %v3529_v30 = vpop.eup %3528 }
 0x172   :  { %v181_v31 = vmul.f32 %v3529_v30, %v165_v13 }
 0x174   :  { %v189_v35 = vmul.f32 %v2893_v32, %v181_v31 }
 0x175   :  { %v3531_v33 = vpop.eup %3530 }
 0x176   :  { %v182_v34 = vmul.f32 %v3531_v33, %v166_v17  ;;  %v3896_v38 = vadd.f32 %v2894_v36, %v189_v35 }
 0x178   :  { %v190_v37 = vmul.f32 %v2893_v32, %v182_v34 }
 0x17a   :  { %v3898_v39 = vadd.f32 %v2894_v36, %v190_v37 }
 0x17c   :  { %v201_v40 = vpack.c.bf16 %v3898_v39, %v3896_v38 }
 0x17e   :  { %3098 = vmatmul.mubr.msk.bf16.vlgmr.msra.gmra.mrb[0].mxu0 %vm155_vm0, %v201_v40 }
 0x251   :  { %v262_v42 = vpop.f32.mrb[0].mxu0 }
 0x252   :  { %v3904_v43 = vadd.f32 %v2895_v41, %v262_v42  ;;  %v3099_v44 = vpop.f32.mrb[1].mxu0 }
 0x253   :  { %v265_v45 = vpop.f32.mrb[2].mxu0 }
 0x254   :  { %v3906_v46 = vadd.f32 %v2895_v41, %v265_v45  ;;  %v3100_v47 = vpop.f32.mrb[3].mxu0  ;;  %3105 = vmatprep.mubr.msk.f32.mxu1 %vm275_vm2, %v3904_v43 }
 0x256   :  { %v3912_v48 = vpack.i.bf16 %v3906_v46, %v3904_v43 }
 0x258   :  { %3430 = vrot.lane.b32.xlu1 %v3912_v48, %s3684_s0  ;;  %3425 = vrot.lane.b32.xlu0 %v3912_v48, %s3685_s5 }
 0x25c   :  { %475 = vrot.lane.b32.xlu1 %v3904_v43, %s3686_s9  ;;  %477 = vrot.lane.b32.xlu0 %v3906_v46, %s3686_s9 }
 0x260   :  { %3435 = vrot.lane.b32.xlu1 %v3912_v48, %s3687_s13  ;;  %692 = vrot.lane.b32.xlu0 %v3906_v46, %s3688_s21 }
 0x264   :  { %690 = vrot.lane.b32.xlu1 %v3904_v43, %s3688_s21 }
 0x268   :  { %3440 = vrot.lane.b32.xlu1 %v3912_v48, %s3689_s25 }
 0x2ca   :  { %v3431_v49 = vpop.permute.xlu1 %3430  ;;  %v3426_v50 = vpop.permute.xlu0 %3425 }
 0x2cb   :  { %v3433_v51 = vunpack.i.h.bf16 %v3431_v49  ;;  %v3432_v52 = vunpack.i.l.bf16 %v3431_v49  ;;  %v3428_v53 = vunpack.i.h.bf16 %v3426_v50  ;;  %v3427_v54 = vunpack.i.l.bf16 %v3426_v50 }
 0x2cd   :  { %v3303_v56 = vpack.c.bf16 %v3433_v51, %v3432_v52  ;;  %v3293_v57 = vpack.c.bf16 %v3428_v53, %v3427_v54 }
 0x2ce   :  { %v476_v58 = vpop.permute.xlu1 %475  ;;  %v478_v0 = vpop.permute.xlu0 %477 }
 0x2cf   :  { %3295 = vmatprep.subr.msk.bf16.mxu1 %vm3932_vm3, %v3293_v57  ;;  %3305 = vmatprep.subr.msk.bf16.mxu0 %vm3932_vm3, %v3303_v56 }
 0x2d0   :  { %3119 = vmatprep.mubr.msk.f32.mxu0 %vm275_vm2, %v476_v58  ;;  %3298 = vmatpush3.bf16.xpose.msk.msra.mxu1 %vm3932_vm3, %v3293_v57 }
 0x2d1   :  { %3308 = vmatpush3.bf16.xpose.msk.msra.mxu0 %vm3932_vm3, %v3303_v56 }
 0x2d2   :  { %v3436_v59 = vpop.permute.xlu1 %3435  ;;  %v693_v5 = vpop.permute.xlu0 %692 }
 0x2d3   :  { %v3438_v60 = vunpack.i.h.bf16 %v3436_v59  ;;  %v3437_v61 = vunpack.i.l.bf16 %v3436_v59 }
 0x2d5   :  { %v3313_v62 = vpack.c.bf16 %v3438_v60, %v3437_v61 }
 0x2d6   :  { %v691_v63 = vpop.permute.xlu1 %690 }
 0x2d7   :  { %3106 = vmatmul.mubr.msk.f32.vlgmr.msra.gmra.mrb[0].mxu1 %vm275_vm2, %v3906_v46  ;;  %3315 = vmatprep.subr.msk.bf16.mxu0 %vm3932_vm3, %v3313_v62 }
 0x2d8   :  { %3120 = vmatmul.mubr.msk.f32.vlgmr.msra.gmra.mrb[4].mxu0 %vm275_vm2, %v478_v0 }
 0x2d9   :  { %3318 = vmatpush3.bf16.xpose.msk.msra.mxu0 %vm3932_vm3, %v3313_v62  ;;  %3133 = vmatprep.mubr.msk.f32.mxu0 %vm275_vm2, %v691_v63 }
 0x2da   :  { %v3441_v1 = vpop.permute.xlu1 %3440 }
 0x2db   :  { %v3443_v2 = vunpack.i.h.bf16 %v3441_v1  ;;  %v3442_v3 = vunpack.i.l.bf16 %v3441_v1 }
 0x2dd   :  { %v3299_v4 = vpack.c.bf16 %v3443_v2, %v3442_v3 }
 0x2df   :  { %3300 = vmatprep.subr.bf16.mxu1 %v3299_v4 }
 0x2e0   :  { %3134 = vmatmul.mubr.msk.f32.vlgmr.msra.gmra.mrb[6].mxu0 %vm275_vm2, %v693_v5  ;;  %3302 = vmatpush3.bf16.msra.mxu1 %v3299_v4 }
 0x3aa   :  { %v3107_v6 = vpop.f32.mrb[0].mxu1 }
 0x3ab   :  { %v360_v8 = vmul.f32 0.35355338, %v3107_v6  ;;  %v3121_v9 = vpop.f32.mrb[4].mxu0  ;;  %v350_v10 = vpop.f32.mrb[1].mxu1 }
 0x3ac   :  { %v567_v12 = vmul.f32 0.35355338, %v3121_v9  ;;  %v359_v13 = vmul.f32 0.35355338, %v350_v10  ;;  %v557_v14 = vpop.f32.mrb[5].mxu0 }
 0x3ad   :  { %v362_v15 = vadd.f32 %v360_v8, %v3955_v7  ;;  %v566_v17 = vmul.f32 0.35355338, %v557_v14 }
 0x3ae   :  { %v361_v16 = vadd.f32 %v359_v13, %v3958_v11  ;;  %v569_v19 = vadd.f32 %v567_v12, %v3955_v7 }
 0x3af   :  { %v367_v18 = vsel %vm363_vm4, %v362_v15, -inf  ;;  %v568_v24 = vadd.f32 %v566_v17, %v3958_v11 }
 0x3b0   :  { %368 = vmax.xlane.f32.xlu0 %v367_v18  ;;  %v364_v20 = vsel %vm363_vm4, %v361_v16, -inf  ;;  %v573_v23 = vsel %vm363_vm4, %v569_v19, -inf }
 0x3b1   :  { %365 = vmax.xlane.f32.xlu1 %v364_v20  ;;  %v570_v27 = vsel %vm363_vm4, %v568_v24, -inf }
 0x3b3   :  { %v3135_v21 = vpop.f32.mrb[6].mxu0 }
 0x3b4   :  { %v782_v25 = vmul.f32 0.35355338, %v3135_v21  ;;  %v772_v26 = vpop.f32.mrb[7].mxu0  ;;  %574 = vmax.xlane.f32.xlu0 %v573_v23 }
 0x3b5   :  { %v781_v30 = vmul.f32 0.35355338, %v772_v26 }
 0x3b6   :  { %v784_v28 = vadd.f32 %v782_v25, %v3955_v7 }
 0x3b7   :  { %v783_v31 = vadd.f32 %v781_v30, %v3958_v11 }
 0x3b8   :  { %571 = vmax.xlane.f32.xlu0 %v570_v27  ;;  %v788_v29 = vsel %vm363_vm4, %v784_v28, -inf }
 0x3b9   :  { %v785_v32 = vsel %vm363_vm4, %v783_v31, -inf }
 0x3bc   :  { %789 = vmax.xlane.f32.xlu0 %v788_v29 }
 0x3c2   :  { %3450 = vrot.lane.b32.xlu1 %v3912_v48, %s3690_s29 }
 0x3c6   :  { %3455 = vrot.lane.b32.xlu1 %v3912_v48, %s3691_s3 }
 0x3d2   :  { %3445 = vrot.lane.b32.xlu0 %v3912_v48, %s3692_s15 }
 0x3d6   :  { %907 = vrot.lane.b32.xlu0 %v3906_v46, %s3693_s16 }
 0x3ea   :  { %786 = vmax.xlane.f32.xlu1 %v785_v32 }
 0x3fb   :  { %905 = vrot.lane.b32.xlu1 %v3904_v43, %s3693_s16 }
 0x43d   :  { %v369_v33 = vpop.xlane.xlu0 %368 }
 0x43e   :  { %v371_v34 = vsub.f32 %v362_v15, %v369_v33  ;;  %v366_v35 = vpop.xlane.xlu1 %365 }
 0x43f   :  { %v370_v36 = vsub.f32 %v361_v16, %v366_v35 }
 0x440   :  { %v374_v37 = vmul.f32 1.442695, %v371_v34 }
 0x441   :  { %v372_v40 = vmul.f32 1.442695, %v370_v36  ;;  %v575_v41 = vpop.xlane.xlu0 %574 }
 0x442   :  { %v577_v42 = vsub.f32 %v569_v19, %v575_v41  ;;  %v3451_v49 = vpop.permute.xlu1 %3450 }
 0x443   :  { %3532 = vpow2.f32 %v372_v40  ;;  %v3453_v53 = vunpack.i.h.bf16 %v3451_v49  ;;  %v3452_v54 = vunpack.i.l.bf16 %v3451_v49 }
 0x444   :  { %3534 = vpow2.f32 %v374_v37  ;;  %v580_v46 = vmul.f32 1.442695, %v577_v42 }
 0x445   :  { %v572_v44 = vpop.xlane.xlu0 %571  ;;  %v3319_v60 = vpack.c.bf16 %v3453_v53, %v3452_v54 }
 0x446   :  { %v576_v45 = vsub.f32 %v568_v24, %v572_v44  ;;  %v3456_v58 = vpop.permute.xlu1 %3455 }
 0x447   :  { %v3458_v61 = vunpack.i.h.bf16 %v3456_v58  ;;  %v3457_v62 = vunpack.i.l.bf16 %v3456_v58 }
 0x448   :  { %v578_v47 = vmul.f32 1.442695, %v576_v45 }
 0x449   :  { %v790_v50 = vpop.xlane.xlu0 %789  ;;  %v3323_v1 = vpack.c.bf16 %v3458_v61, %v3457_v62 }
 0x44a   :  { %3536 = vpow2.f32 %v578_v47  ;;  %v792_v2 = vsub.f32 %v784_v28, %v790_v50 }
 0x44b   :  { %3538 = vpow2.f32 %v580_v46 }
 0x44c   :  { %v795_v5 = vmul.f32 1.442695, %v792_v2 }
 0x44d   :  { %v3982_v51 = vpop.eup %3532  ;;  %v3446_v43 = vpop.permute.xlu0 %3445 }
 0x44e   :  { %v3984_v52 = vpop.eup %3534  ;;  %v3448_v56 = vunpack.i.h.bf16 %v3446_v43  ;;  %v3447_v57 = vunpack.i.l.bf16 %v3446_v43  ;;  %3112 = vmatprep.mubr.msk.f32.mxu1 %vm363_vm4, %v3982_v51  ;;  %v376_v53 = vsel %vm363_vm4, %v3982_v51, 0.0 }
 0x44f   :  { %3113 = vmatmul.mubr.msk.f32.vlgmr.msra.gmra.mrb[2].mxu1 %vm363_vm4, %v3984_v52  ;;  %v379_v54 = vsel %vm363_vm4, %v3984_v52, 0.0 }
 0x450   :  { %v3309_v59 = vpack.c.bf16 %v3448_v56, %v3447_v57 }
 0x451   :  { %v908_v12 = vpop.permute.xlu0 %907 }
 0x452   :  { %3310 = vmatprep.subr.bf16.mxu1 %v3309_v59 }
 0x453   :  { %3312 = vmatpush3.bf16.msra.mxu1 %v3309_v59 }
 0x454   :  { %v3537_v63 = vpop.eup %3536  ;;  %3320 = vmatprep.subr.bf16.mxu1 %v3319_v60 }
 0x455   :  { %v3539_v0 = vpop.eup %3538  ;;  %3126 = vmatprep.mubr.msk.f32.mxu1 %vm363_vm4, %v3537_v63  ;;  %v582_v28 = vsel %vm363_vm4, %v3537_v63, 0.0 }
 0x456   :  { %3127 = vmatmul.mubr.msk.f32.vlgmr.msra.gmra.mrb[4].mxu1 %vm363_vm4, %v3539_v0  ;;  %v585_v29 = vsel %vm363_vm4, %v3539_v0, 0.0 }
 0x457   :  { %3322 = vmatpush3.bf16.msra.mxu1 %v3319_v60 }
 0x458   :  { %3325 = vmatprep.subr.msk.bf16.mxu1 %vm3932_vm3, %v3323_v1 }
 0x477   :  { %v787_v3 = vpop.xlane.xlu1 %786 }
 0x478   :  { %v791_v4 = vsub.f32 %v783_v31, %v787_v3 }
 0x47a   :  { %v793_v6 = vmul.f32 1.442695, %v791_v4 }
 0x47b   :  { %v906_v10 = vpop.permute.xlu1 %905 }
 0x47c   :  { %3540 = vpow2.f32 %v793_v6 }
 0x47d   :  { %3542 = vpow2.f32 %v795_v5 }
 0x486   :  { %v3541_v8 = vpop.eup %3540 }
 0x487   :  { %v3543_v9 = vpop.eup %3542  ;;  %3140 = vmatprep.mubr.msk.f32.mxu1 %vm363_vm4, %v3541_v8  ;;  %v797_v30 = vsel %vm363_vm4, %v3541_v8, 0.0 }
 0x488   :  { %3141 = vmatmul.mubr.msk.f32.vlgmr.msra.gmra.mrb[6].mxu1 %vm363_vm4, %v3543_v9  ;;  %v800_v31 = vsel %vm363_vm4, %v3543_v9, 0.0 }
 0x489   :  { %3328 = vmatpush3.bf16.xpose.msk.msra.mxu1 %vm3932_vm3, %v3323_v1  ;;  %3147 = vmatprep.mubr.msk.f32.mxu1 %vm275_vm2, %v906_v10 }
 0x48a   :  { %3165 = vmatprep.subr.bf16.mxu1 %v3682_v22 }
 0x490   :  { %3148 = vmatmul.mubr.msk.f32.vlgmr.msra.gmra.mrb[8].mxu1 %vm275_vm2, %v908_v12 }
 0x491   :  { %3169 = vmatprep.mubr.msk.bf16.mxu1 %vm3683_vm1, %v3682_v22 }
 0x522   :  { %v4003_v13 = vpop.f32.mrb[2].mxu1 }
 0x523   :  { %v4005_v14 = vpop.f32.mrb[3].mxu1 }
 0x529   :  { %v4007_v15 = vpop.f32.mrb[4].mxu1 }
 0x52a   :  { %v4009_v16 = vpop.f32.mrb[5].mxu1 }
 0x55b   :  { %v4011_v17 = vpop.f32.mrb[6].mxu1 }
 0x55c   :  { %v883_v18 = vpop.f32.mrb[7].mxu1 }
 0x563   :  { %v3149_v19 = vpop.f32.mrb[8].mxu1 }
 0x564   :  { %v997_v20 = vmul.f32 0.35355338, %v3149_v19  ;;  %v987_v21 = vpop.f32.mrb[9].mxu1 }
 0x565   :  { %v996_v23 = vmul.f32 0.35355338, %v987_v21 }
 0x566   :  { %v999_v24 = vadd.f32 %v997_v20, %v3955_v7 }
 0x567   :  { %v998_v25 = vadd.f32 %v996_v23, %v3958_v11 }
 0x568   :  { %v1003_v26 = vsel %vm363_vm4, %v999_v24, -inf }
 0x569   :  { %1004 = vmax.xlane.f32.xlu0 %v1003_v26  ;;  %v1000_v27 = vsel %vm363_vm4, %v998_v25, -inf }
 0x56a   :  { %1001 = vmax.xlane.f32.xlu1 %v1000_v27  ;;  %v2923_v27 = vld [vmem:[%s3752_s14] ss:$0 sm:$0xff]  ;;  %s4322_s14 = sld [smem:[#allocation7_spill]] }
 0x56e   :  { %583 = vadd.xlane.f32.xlu1 %v582_v28 }
 0x572   :  { %586 = vadd.xlane.f32.xlu1 %v585_v29 }
 0x576   :  { %798 = vadd.xlane.f32.xlu1 %v797_v30 }
 0x57a   :  { %801 = vadd.xlane.f32.xlu1 %v800_v31 }
 0x57f   :  { %3460 = vrot.lane.b32.xlu0 %v3912_v48, %s3694_s18 }
 0x5f6   :  { %v1005_v32 = vpop.xlane.xlu0 %1004 }
 0x5f7   :  { %v1007_v33 = vsub.f32 %v999_v24, %v1005_v32  ;;  %v1002_v34 = vpop.xlane.xlu1 %1001 }
 0x5f8   :  { %v1006_v35 = vsub.f32 %v998_v25, %v1002_v34 }
 0x5f9   :  { %v1010_v36 = vmul.f32 1.442695, %v1007_v33 }
 0x5fa   :  { %v1008_v37 = vmul.f32 1.442695, %v1006_v35  ;;  %v3461_v40 = vpop.permute.xlu0 %3460 }
 0x5fb   :  { %3544 = vpow2.f32 %v1010_v36  ;;  %v3463_v41 = vunpack.i.h.bf16 %v3461_v40  ;;  %v3462_v42 = vunpack.i.l.bf16 %v3461_v40  ;;  %v584_v45 = vpop.xlane.xlu1 %583 }
 0x5fc   :  { %3546 = vpow2.f32 %v1008_v37 }
 0x5fd   :  { %v3329_v44 = vpack.c.bf16 %v3463_v41, %v3462_v42 }
 0x5ff   :  { %3330 = vmatprep.subr.bf16.mxu0 %v3329_v44  ;;  %v587_v47 = vpop.xlane.xlu1 %586 }
 0x600   :  { %3332 = vmatpush3.bf16.msra.mxu0 %v3329_v44 }
 0x601   :  { %3157 = vmatprep.subr.bf16.mxu0 %v3682_v22 }
 0x603   :  { %v799_v43 = vpop.xlane.xlu1 %798 }
 0x604   :  { %3548 = vrcp.f32 %v799_v43 }
 0x605   :  { %v3545_v46 = vpop.eup %3544  ;;  %3550 = vrcp.f32 %v584_v45 }
 0x606   :  { %v3547_v48 = vpop.eup %3546  ;;  %v1015_v49 = vsel %vm363_vm4, %v3545_v46, 0.0  ;;  %3552 = vrcp.f32 %v587_v47 }
 0x607   :  { %1016 = vadd.xlane.f32.xlu0 %v1015_v49  ;;  %3154 = vmatprep.mubr.msk.f32.mxu0 %vm363_vm4, %v3547_v48  ;;  %v1012_v50 = vsel %vm363_vm4, %v3547_v48, 0.0  ;;  %v802_v56 = vpop.xlane.xlu1 %801 }
 0x608   :  { %3155 = vmatmul.mubr.msk.f32.vlgmr.msra.gmra.mrb[8].mxu0 %vm363_vm4, %v3545_v46  ;;  %1013 = vadd.xlane.f32.xlu1 %v1012_v50  ;;  %3554 = vrcp.f32 %v802_v56  ;;  %v3509_v50 = vld [vmem:[%s3767_s30 + $0x8] sm:$0xff]  }
 0x609   :  { %3161 = vmatprep.mubr.msk.bf16.mxu0 %vm3683_vm1, %v3682_v22 }
 0x60c   :  { %377 = vadd.xlane.f32.xlu1 %v376_v53 }
 0x60e   :  { %v3549_v57 = vpop.eup %3548 }
 0x60f   :  { %v892_v58 = vmul.f32 %v3549_v57, %v883_v18  ;;  %v3551_v59 = vpop.eup %3550 }
 0x610   :  { %380 = vadd.xlane.f32.xlu1 %v379_v54  ;;  %v677_v60 = vmul.f32 %v3551_v59, %v4009_v16  ;;  %v3553_v61 = vpop.eup %3552 }
 0x611   :  { %v678_v51 = vmul.f32 %v3553_v61, %v4007_v15  ;;  %v3507_v15 = vld [vmem:[%s3747_s8 + $0x8] sm:$0xff]   ;;  %v2927_v61 = vld [vmem:[%s3757_s19] ss:$0 sm:$0xff]  ;;  %s4323_s19 = sld [smem:[#allocation10_spill]] }
 0x612   :  { %v3555_v52 = vpop.eup %3554 }
 0x613   :  { %v893_v62 = vmul.f32 %v3555_v52, %v4011_v17 }
 0x61d   :  { %896 = vrot.lane.b32.xlu0 %v892_v58, %s3695_s22 }
 0x621   :  { %681 = vrot.lane.b32.xlu1 %v677_v60, %s3696_s23 }
 0x625   :  { %683 = vrot.lane.b32.xlu1 %v678_v51, %s3696_s23 }
 0x629   :  { %898 = vrot.lane.b32.xlu1 %v893_v62, %s3695_s22 }
 0x694   :  { %v1017_v3 = vpop.xlane.xlu0 %1016 }
 0x695   :  { %v1014_v63 = vpop.xlane.xlu1 %1013 }
 0x698   :  { %v897_v9 = vpop.permute.xlu0 %896 }
 0x699   :  { %v378_v0 = vpop.xlane.xlu1 %377 }
 0x69a   :  { %3556 = vrcp.f32 %v378_v0 }
 0x69d   :  { %v381_v1 = vpop.xlane.xlu1 %380 }
 0x69e   :  { %3558 = vrcp.f32 %v381_v1 }
 0x69f   :  { %3560 = vrcp.f32 %v1014_v63  ;;  %v2928_v63 = vld [vmem:[%s3762_s24] ss:$0 sm:$0xff]  ;;  %s4324_s24 = sld [smem:[#allocation8_spill]] }
 0x6a0   :  { %3562 = vrcp.f32 %v1017_v3 }
 0x6a1   :  { %v682_v2 = vpop.permute.xlu1 %681 }
 0x6a4   :  { %v3557_v4 = vpop.eup %3556 }
 0x6a5   :  { %v471_v5 = vmul.f32 %v3557_v4, %v4005_v14  ;;  %v684_v6 = vpop.permute.xlu1 %683  ;;  %v3506_v14 = vld [vmem:[%s3747_s8] sm:$0xff]   ;;  %s4321_s8 = sld [smem:[#allocation6_spill]] }
 0x6a6   :  { %3158 = vmatpush3.bf16.msra.mxu0 %v3506_v14  ;;  %v3510_v4 = vld [vmem:[%s3777_s12] sm:$0xff]  }
 0x6a7   :  { %473 = vst.msk [vmem:[#allocation2] sm:$0xff] %vm275_vm2, %v471_v5  ;;  %3159 = vmatprep.subr.bf16.mxu0 %v3682_v22  ;;  %v3511_v5 = vld [vmem:[%s3777_s12 + $0x8] sm:$0xff]  }
 0x6a8   :  { %v3559_v8 = vpop.eup %3558  ;;  %688 = vst.msk [vmem:[#allocation2] sm:$0xff] %vm687_vm5, %v682_v2 }
 0x6a9   :  { %v472_v10 = vmul.f32 %v3559_v8, %v4003_v13  ;;  %903 = vst.msk [vmem:[#allocation2] sm:$0xff] %vm902_vm6, %v897_v9  ;;  %v899_v12 = vpop.permute.xlu1 %898  ;;  %v3561_v17 = vpop.eup %3560  ;;  %v3513_v8 = vld [vmem:[%s3777_s12 + $0x18] sm:$0xff]  }
 0x6aa   :  { %3160 = vmatpush3.bf16.msra.mxu0 %v3507_v15  ;;  %v3563_v19 = vpop.eup %3562 }
 0x6ab   :  { %474 = vst.msk [vmem:[#allocation2 + $0x8] sm:$0xff] %vm275_vm2, %v472_v10  ;;  %3173 = vmatprep.subr.bf16.mxu0 %v3682_v22  ;;  %v2929_v9 = vld [vmem:[%s4321_s8] ss:$0 sm:$0xff] }
 0x6ac   :  { %689 = vst.msk [vmem:[#allocation2 + $0x8] sm:$0xff] %vm687_vm5, %v684_v6  ;;  %v3512_v6 = vld [vmem:[%s3777_s12 + $0x10] sm:$0xff]   ;;  %s4326_s12 = sld [smem:[#allocation11_spill]] }
 0x6ad   :  { %904 = vst.msk [vmem:[#allocation2 + $0x8] sm:$0xff] %vm902_vm6, %v899_v12 }
 0x6db   :  { %v3156_v16 = vpop.f32.mrb[8].mxu0 }
 0x6dc   :  { %v1098_v18 = vpop.f32.mrb[9].mxu0  ;;  %v1108_v20 = vmul.f32 %v3563_v19, %v3156_v16 }
 0x6dd   :  { %v1107_v13 = vmul.f32 %v3561_v17, %v1098_v18 }
 0x6df   :  { %1111 = vrot.lane.b32.xlu1 %v1107_v13, %s3697_s26 }
 0x6e3   :  { %1113 = vrot.lane.b32.xlu1 %v1108_v20, %s3697_s26 }
 0x751   :  { %v1112_v21 = vpop.permute.xlu1 %1111 }
 0x752   :  { %1118 = vst.msk [vmem:[#allocation2] sm:$0xff] %vm1117_vm7, %v1112_v21 }
 0x755   :  { %v1114_v23 = vpop.permute.xlu1 %1113 }
 0x756   :  { %1119 = vst.msk [vmem:[#allocation2 + $0x8] sm:$0xff] %vm1117_vm7, %v1114_v23 }
 0x759   :  { %v1120_v24 = vld [vmem:[#allocation2] sm:$0xff] }
 0x75d   :  { %v1121_v25 = vld [vmem:[#allocation2 + $0x8] sm:$0xff] }
 0x75e   :  { %v1122_v26 = vpack.c.bf16 %v1121_v25, %v1120_v24 }
 0x760   :  { %3162 = vmatmul.mubr.msk.bf16.vlgmr.msra.gmra.mrb[12].mxu0 %vm155_vm0, %v1122_v26 }
 0x761   :  { %3181 = vmatprep.mubr.msk.bf16.mxu0 %vm3683_vm1, %v3682_v22  ;;  %3174 = vmatpush3.bf16.msra.mxu0 %v3510_v4  ;;  %v2939_v4 = vld [vmem:[%s4324_s24] ss:$0 sm:$0xff] }
 0x762   :  { %3175 = vmatprep.subr.bf16.mxu0 %v3682_v22 }
 0x765   :  { %3176 = vmatpush3.bf16.msra.mxu0 %v3511_v5 }
 0x766   :  { %3177 = vmatprep.subr.bf16.mxu0 %v3682_v22 }
 0x769   :  { %3178 = vmatpush3.bf16.msra.mxu0 %v3512_v6 }
 0x76a   :  { %3179 = vmatprep.subr.bf16.mxu0 %v3682_v22 }
 0x76d   :  { %3180 = vmatpush3.bf16.msra.mxu0 %v3513_v8 }
 0x833   :  { %v1183_v28 = vpop.f32.mrb[12].mxu0 }
 0x834   :  { %v1184_v29 = vadd.f32 %v2923_v27, %v1183_v28  ;;  %v3163_v30 = vpop.f32.mrb[13].mxu0 }
 0x835   :  { %v1186_v31 = vpop.f32.mrb[14].mxu0 }
 0x836   :  { %v1187_v32 = vadd.f32 %v2923_v27, %v1186_v31  ;;  %v3164_v33 = vpop.f32.mrb[15].mxu0  ;;  %v1190_v34 = vadd.f32 %v1184_v29, %v3896_v38 }
 0x838   :  { %v1194_v35 = vsel %vm155_vm0, %v1190_v34, 0.0  ;;  %v1191_v36 = vadd.f32 %v1187_v32, %v3898_v39  ;;  %v3508_v39 = vld [vmem:[%s3767_s30] sm:$0xff]   ;;  %s4325_s30 = sld [smem:[#allocation9_spill]] }
 0x839   :  { %1195 = vadd.xlane.f32.xlu1 %v1194_v35  ;;  %3166 = vmatpush3.bf16.msra.mxu1 %v3508_v39 }
 0x83a   :  { %v1197_v37 = vsel %vm155_vm0, %v1191_v36, 0.0  ;;  %3167 = vmatprep.subr.bf16.mxu1 %v3682_v22 }
 0x83b   :  { %1198 = vadd.xlane.f32.xlu0 %v1197_v37  ;;  %v2933_v37 = vld [vmem:[%s4322_s14] ss:$0 sm:$0xff] }
 0x83d   :  { %3168 = vmatpush3.bf16.msra.mxu1 %v3509_v50 }
 0x83e   :  { %3185 = vmatprep.subr.bf16.mxu1 %v3682_v22 }
 0x8c6   :  { %v1196_v40 = vpop.xlane.xlu1 %1195 }
 0x8c7   :  { %v1200_v41 = vmul.f32 0.03125, %v1196_v40 }
 0x8c8   :  { %v1199_v42 = vpop.xlane.xlu0 %1198 }
 0x8c9   :  { %v1202_v44 = vsub.f32 %v1190_v34, %v1200_v41  ;;  %v1201_v45 = vmul.f32 0.03125, %v1199_v42 }
 0x8cb   :  { %v1203_v46 = vsub.f32 %v1191_v36, %v1201_v45  ;;  %v1204_v47 = vmul.f32 %v1202_v44, %v1202_v44 }
 0x8cd   :  { %v1206_v48 = vsel %vm155_vm0, %v1204_v47, 0.0  ;;  %v1205_v38 = vmul.f32 %v1203_v46, %v1203_v46 }
 0x8ce   :  { %1207 = vadd.xlane.f32.xlu1 %v1206_v48 }
 0x8cf   :  { %v1209_v49 = vsel %vm155_vm0, %v1205_v38, 0.0 }
 0x8d2   :  { %1210 = vadd.xlane.f32.xlu1 %v1209_v49 }
 0x95b   :  { %v1208_v43 = vpop.xlane.xlu1 %1207 }
 0x95c   :  { %v1212_v53 = vmul.f32 0.03125, %v1208_v43 }
 0x95e   :  { %v1214_v54 = vadd.f32 1e-12, %v1212_v53 }
 0x95f   :  { %v1211_v56 = vpop.xlane.xlu1 %1210 }
 0x960   :  { %3564 = vrsqrt.f32 %v1214_v54  ;;  %v1213_v57 = vmul.f32 0.03125, %v1211_v56 }
 0x962   :  { %v1215_v58 = vadd.f32 1e-12, %v1213_v57 }
 0x964   :  { %3566 = vrsqrt.f32 %v1215_v58 }
 0x96a   :  { %v3565_v59 = vpop.eup %3564 }
 0x96b   :  { %v1218_v60 = vmul.f32 %v3565_v59, %v1202_v44 }
 0x96d   :  { %v1226_v52 = vmul.f32 %v2927_v61, %v1218_v60 }
 0x96e   :  { %v3567_v51 = vpop.eup %3566 }
 0x96f   :  { %v1219_v62 = vmul.f32 %v3567_v51, %v1203_v46  ;;  %v1234_v1 = vadd.f32 %v2928_v63, %v1226_v52  ;;  %v3515_v51 = vld [vmem:[%s4323_s19 + $0x8] sm:$0xff]  }
 0x971   :  { %v1227_v0 = vmul.f32 %v2927_v61, %v1219_v62  ;;  %v3514_v61 = vld [vmem:[%s4323_s19] sm:$0xff]  }
 0x973   :  { %v1235_v2 = vadd.f32 %v2928_v63, %v1227_v0 }
 0x975   :  { %v1236_v3 = vpack.c.bf16 %v1235_v2, %v1234_v1 }
 0x977   :  { %3170 = vmatmul.mubr.msk.bf16.vlgmr.msra.gmra.mrb[12].mxu1 %vm155_vm0, %v1236_v3 }
 0x978   :  { %3189 = vmatprep.mubr.msk.bf16.mxu1 %vm3683_vm1, %v3682_v22  ;;  %3186 = vmatpush3.bf16.msra.mxu1 %v3514_v61 }
 0x979   :  { %3187 = vmatprep.subr.bf16.mxu1 %v3682_v22 }
 0x97c   :  { %3188 = vmatpush3.bf16.msra.mxu1 %v3515_v51 }
 0xa4a   :  { %v1297_v10 = vpop.f32.mrb[12].mxu1 }
 0xa4b   :  { %v1298_v12 = vadd.f32 %v2929_v9, %v1297_v10  ;;  %v3171_v14 = vpop.f32.mrb[13].mxu1  ;;  %v2940_v10 = vld [vmem:[%s4325_s30] ss:$0 sm:$0xff] }
 0xa4c   :  { %v1300_v15 = vpop.f32.mrb[14].mxu1 }
 0xa4d   :  { %v1306_v16 = vmul.f32 0.044715, %v1298_v12  ;;  %v1301_v17 = vadd.f32 %v2929_v9, %v1300_v15  ;;  %v3172_v18 = vpop.f32.mrb[15].mxu1  ;;  %v1304_v31 = vmul.f32 0.5, %v1298_v12 }
 0xa4f   :  { %v1308_v13 = vmul.f32 %v1306_v16, %v1298_v12  ;;  %v1307_v19 = vmul.f32 0.044715, %v1301_v17  ;;  %v1305_v32 = vmul.f32 0.5, %v1301_v17 }
 0xa51   :  { %v1310_v20 = vmul.f32 %v1308_v13, %v1298_v12  ;;  %v1309_v21 = vmul.f32 %v1307_v19, %v1301_v17 }
 0xa53   :  { %v1312_v23 = vadd.f32 %v1310_v20, %v1298_v12  ;;  %v1311_v24 = vmul.f32 %v1309_v21, %v1301_v17 }
 0xa55   :  { %v1314_v25 = vmul.f32 0.7978846, %v1312_v23  ;;  %v1313_v26 = vadd.f32 %v1311_v24, %v1301_v17  ;;  %v2941_v17 = vld [vmem:[%s4326_s12] ss:$0 sm:$0xff] }
 0xa57   :  { %3568 = vtanh.f32 %v1314_v25  ;;  %v1315_v27 = vmul.f32 0.7978846, %v1313_v26 }
 0xa59   :  { %3570 = vtanh.f32 %v1315_v27 }
 0xa61   :  { %v3569_v28 = vpop.eup %3568 }
 0xa62   :  { %v1318_v29 = vadd.f32 1.0, %v3569_v28 }
 0xa63   :  { %v3571_v30 = vpop.eup %3570 }
 0xa64   :  { %v1319_v33 = vadd.f32 1.0, %v3571_v30  ;;  %v1320_v34 = vmul.f32 %v1318_v29, %v1304_v31 }
 0xa66   :  { %v1321_v35 = vmul.f32 %v1319_v33, %v1305_v32 }
 0xa68   :  { %v1322_v36 = vpack.c.bf16 %v1321_v35, %v1320_v34 }
 0xa6a   :  { %3182 = vmatmul.mubr.msk.bf16.vlgmr.msra.gmra.mrb[16].mxu0 %vm1362_vm8, %v1322_v36 }
 0xb3d   :  { %v1400_v40 = vpop.f32.mrb[16].mxu0 }
 0xb3e   :  { %v1401_v41 = vadd.f32 %v2933_v37, %v1400_v40  ;;  %v3183_v42 = vpop.f32.mrb[17].mxu0 }
 0xb3f   :  { %v1403_v44 = vpop.f32.mrb[18].mxu0 }
 0xb40   :  { %v1404_v45 = vadd.f32 %v2933_v37, %v1403_v44  ;;  %v3184_v46 = vpop.f32.mrb[19].mxu0  ;;  %v1407_v47 = vadd.f32 %v1401_v41, %v1234_v1 }
 0xb42   :  { %v1411_v48 = vsel %vm155_vm0, %v1407_v47, 0.0  ;;  %v1408_v38 = vadd.f32 %v1404_v45, %v1235_v2 }
 0xb43   :  { %1412 = vadd.xlane.f32.xlu0 %v1411_v48 }
 0xb44   :  { %v1414_v49 = vsel %vm155_vm0, %v1408_v38, 0.0 }
 0xb45   :  { %1415 = vadd.xlane.f32.xlu1 %v1414_v49 }
 0xbd0   :  { %v1413_v39 = vpop.xlane.xlu0 %1412 }
 0xbd1   :  { %v1417_v50 = vmul.f32 0.03125, %v1413_v39 }
 0xbd2   :  { %v1416_v43 = vpop.xlane.xlu1 %1415 }
 0xbd3   :  { %v1419_v53 = vsub.f32 %v1407_v47, %v1417_v50  ;;  %v1418_v54 = vmul.f32 0.03125, %v1416_v43 }
 0xbd5   :  { %v1420_v56 = vsub.f32 %v1408_v38, %v1418_v54  ;;  %v1421_v57 = vmul.f32 %v1419_v53, %v1419_v53 }
 0xbd7   :  { %v1423_v58 = vsel %vm155_vm0, %v1421_v57, 0.0  ;;  %v1422_v59 = vmul.f32 %v1420_v56, %v1420_v56 }
 0xbd8   :  { %1424 = vadd.xlane.f32.xlu0 %v1423_v58 }
 0xbd9   :  { %v1426_v60 = vsel %vm155_vm0, %v1422_v59, 0.0 }
 0xbda   :  { %1427 = vadd.xlane.f32.xlu1 %v1426_v60 }
 0xc65   :  { %v1425_v52 = vpop.xlane.xlu0 %1424 }
 0xc66   :  { %v1429_v62 = vmul.f32 0.03125, %v1425_v52 }
 0xc67   :  { %v1428_v63 = vpop.xlane.xlu1 %1427 }
 0xc68   :  { %v1431_v0 = vadd.f32 1e-12, %v1429_v62  ;;  %v1430_v1 = vmul.f32 0.03125, %v1428_v63 }
 0xc6a   :  { %3572 = vrsqrt.f32 %v1431_v0  ;;  %v1432_v2 = vadd.f32 1e-12, %v1430_v1 }
 0xc6c   :  { %3574 = vrsqrt.f32 %v1432_v2 }
 0xc74   :  { %v3573_v3 = vpop.eup %3572 }
 0xc75   :  { %v1435_v5 = vmul.f32 %v3573_v3, %v1419_v53 }
 0xc76   :  { %v3575_v6 = vpop.eup %3574 }
 0xc77   :  { %v1443_v8 = vmul.f32 %v2939_v4, %v1435_v5  ;;  %v1436_v9 = vmul.f32 %v3575_v6, %v1420_v56 }
 0xc79   :  { %v1444_v12 = vmul.f32 %v2939_v4, %v1436_v9  ;;  %v4095_v14 = vadd.f32 %v2940_v10, %v1443_v8 }
 0xc7b   :  { %v4097_v15 = vadd.f32 %v2940_v10, %v1444_v12 }
 0xc7d   :  { %v1453_v16 = vpack.c.bf16 %v4097_v15, %v4095_v14 }
 0xc7f   :  { %3190 = vmatmul.mubr.msk.bf16.vlgmr.msra.gmra.mrb[16].mxu1 %vm155_vm0, %v1453_v16 }
 0xd52   :  { %v1514_v18 = vpop.f32.mrb[16].mxu1 }
 0xd53   :  { %v4103_v13 = vadd.f32 %v2941_v17, %v1514_v18  ;;  %v3191_v19 = vpop.f32.mrb[17].mxu1 }
 0xd54   :  { %v1517_v20 = vpop.f32.mrb[18].mxu1 }
 0xd55   :  { %v4105_v21 = vadd.f32 %v2941_v17, %v1517_v20  ;;  %v3192_v23 = vpop.f32.mrb[19].mxu1  ;;  %3197 = vmatprep.mubr.msk.f32.mxu1 %vm275_vm2, %v4103_v13 }
 0xd57   :  { %v4111_v24 = vpack.i.bf16 %v4105_v21, %v4103_v13 }
 0xd59   :  { %3470 = vrot.lane.b32.xlu1 %v4111_v24, %s3684_s0  ;;  %3465 = vrot.lane.b32.xlu0 %v4111_v24, %s3685_s5  ;;  %s4334_s0 = sld [smem:[#allocation19_spill]]  ;;  %s4335_s5 = sld [smem:[#allocation22_spill]] }
 0xd5d   :  { %1725 = vrot.lane.b32.xlu1 %v4103_v13, %s3686_s9  ;;  %3475 = vrot.lane.b32.xlu0 %v4111_v24, %s3687_s13  ;;  %s4337_s13 = sld [smem:[#allocation21_spill]] }
 0xd61   :  { %1727 = vrot.lane.b32.xlu1 %v4105_v21, %s3686_s9  ;;  %1939 = vrot.lane.b32.xlu0 %v4103_v13, %s3688_s21  ;;  %s4336_s9 = sld [smem:[#allocation20_spill]] }
 0xd65   :  { %1941 = vrot.lane.b32.xlu1 %v4105_v21, %s3688_s21  ;;  %s3698_s21 = smov [#allocation3]  }
 0xd69   :  { %3480 = vrot.lane.b32.xlu1 %v4111_v24, %s3689_s25  ;;  %s2851_s25 = sshll.u32 %s3698_s21, 4  ;;  %s2852_s25 = int_to_ptr.vmem [resolvable:$true] %s2851_s25 }
 0xd6a   :  { %p3629_p1 = scmp.lt.s32.totalorder %s2852_s25, %s2852_s25 }
 0xdcb   :  { %v3471_v25 = vpop.permute.xlu1 %3470  ;;  %v3466_v26 = vpop.permute.xlu0 %3465 }
 0xdcc   :  { %v3473_v27 = vunpack.i.h.bf16 %v3471_v25  ;;  %v3472_v28 = vunpack.i.l.bf16 %v3471_v25  ;;  %v3468_v29 = vunpack.i.h.bf16 %v3466_v26  ;;  %v3467_v30 = vunpack.i.l.bf16 %v3466_v26 }
 0xdce   :  { %v3343_v31 = vpack.c.bf16 %v3473_v27, %v3472_v28  ;;  %v3333_v32 = vpack.c.bf16 %v3468_v29, %v3467_v30 }
 0xdcf   :  { %v1726_v33 = vpop.permute.xlu1 %1725  ;;  %v3476_v34 = vpop.permute.xlu0 %3475 }
 0xdd0   :  { %v3478_v35 = vunpack.i.h.bf16 %v3476_v34  ;;  %v3477_v36 = vunpack.i.l.bf16 %v3476_v34  ;;  %3335 = vmatprep.subr.msk.bf16.mxu1 %vm3932_vm3, %v3333_v32  ;;  %3345 = vmatprep.subr.msk.bf16.mxu0 %vm3932_vm3, %v3343_v31 }
 0xdd1   :  { %3211 = vmatprep.mubr.msk.f32.mxu0 %vm275_vm2, %v1726_v33  ;;  %3338 = vmatpush3.bf16.xpose.msk.msra.mxu1 %vm3932_vm3, %v3333_v32 }
 0xdd2   :  { %v3353_v37 = vpack.c.bf16 %v3478_v35, %v3477_v36  ;;  %3348 = vmatpush3.bf16.xpose.msk.msra.mxu0 %vm3932_vm3, %v3343_v31 }
 0xdd3   :  { %v1728_v40 = vpop.permute.xlu1 %1727  ;;  %v1940_v42 = vpop.permute.xlu0 %1939 }
 0xdd4   :  { %3355 = vmatprep.subr.msk.bf16.mxu0 %vm3932_vm3, %v3353_v37 }
 0xdd7   :  { %v1942_v41 = vpop.permute.xlu1 %1941 }
 0xdd8   :  { %3198 = vmatmul.mubr.msk.f32.vlgmr.msra.gmra.mrb[10].mxu1 %vm275_vm2, %v4105_v21 }
 0xdd9   :  { %3212 = vmatmul.mubr.msk.f32.vlgmr.msra.gmra.mrb[10].mxu0 %vm275_vm2, %v1728_v40 }
 0xdda   :  { %3358 = vmatpush3.bf16.xpose.msk.msra.mxu0 %vm3932_vm3, %v3353_v37  ;;  %3225 = vmatprep.mubr.msk.f32.mxu0 %vm275_vm2, %v1940_v42 }
 0xddb   :  { %v3481_v44 = vpop.permute.xlu1 %3480 }
 0xddc   :  { %v3483_v45 = vunpack.i.h.bf16 %v3481_v44  ;;  %v3482_v46 = vunpack.i.l.bf16 %v3481_v44 }
 0xdde   :  { %v3339_v47 = vpack.c.bf16 %v3483_v45, %v3482_v46 }
 0xde0   :  { %3340 = vmatprep.subr.bf16.mxu1 %v3339_v47 }
 0xde1   :  { %3226 = vmatmul.mubr.msk.f32.vlgmr.msra.gmra.mrb[20].mxu0 %vm275_vm2, %v1942_v41  ;;  %3342 = vmatpush3.bf16.msra.mxu1 %v3339_v47 }
 0xeab   :  { %v3199_v48 = vpop.f32.mrb[10].mxu1 }
 0xeac   :  { %v1611_v38 = vmul.f32 0.35355338, %v3199_v48  ;;  %v3213_v49 = vpop.f32.mrb[10].mxu0  ;;  %v1601_v39 = vpop.f32.mrb[11].mxu1 }
 0xead   :  { %v1817_v50 = vmul.f32 0.35355338, %v3213_v49  ;;  %v1610_v43 = vmul.f32 0.35355338, %v1601_v39  ;;  %v1807_v53 = vpop.f32.mrb[11].mxu0 }
 0xeae   :  { %v1613_v54 = vadd.f32 %v1611_v38, %v3955_v7  ;;  %v1816_v58 = vmul.f32 0.35355338, %v1807_v53 }
 0xeaf   :  { %v1819_v56 = vadd.f32 %v1817_v50, %v3955_v7  ;;  %v1612_v60 = vadd.f32 %v1610_v43, %v3958_v11 }
 0xeb0   :  { %v1617_v57 = vsel %vm363_vm4, %v1613_v54, -inf  ;;  %v1818_v63 = vadd.f32 %v1816_v58, %v3958_v11 }
 0xeb1   :  { %1618 = vmax.xlane.f32.xlu1 %v1617_v57  ;;  %v1823_v59 = vsel %vm363_vm4, %v1819_v56, -inf  ;;  %v1614_v62 = vsel %vm363_vm4, %v1612_v60, -inf }
 0xeb2   :  { %1824 = vmax.xlane.f32.xlu0 %v1823_v59  ;;  %v1820_v0 = vsel %vm363_vm4, %v1818_v63, -inf }
 0xeb4   :  { %v3227_v61 = vpop.f32.mrb[20].mxu0 }
 0xeb5   :  { %v2031_v51 = vmul.f32 0.35355338, %v3227_v61  ;;  %v2021_v52 = vpop.f32.mrb[21].mxu0 }
 0xeb6   :  { %1615 = vmax.xlane.f32.xlu0 %v1614_v62  ;;  %v2030_v3 = vmul.f32 0.35355338, %v2021_v52 }
 0xeb7   :  { %v2033_v1 = vadd.f32 %v2031_v51, %v3955_v7  ;;  %v3623_v51 = vld [vmem:[%s3722_s17] sm:$0xff] }
 0xeb8   :  { %v2032_v4 = vadd.f32 %v2030_v3, %v3958_v11 }
 0xeb9   :  { %v2037_v2 = vsel %vm363_vm4, %v2033_v1, -inf }
 0xeba   :  { %1821 = vmax.xlane.f32.xlu0 %v1820_v0  ;;  %v2034_v5 = vsel %vm363_vm4, %v2032_v4, -inf }
 0xebe   :  { %2038 = vmax.xlane.f32.xlu0 %v2037_v2 }
 0xec2   :  { %3490 = vrot.lane.b32.xlu1 %v4111_v24, %s3690_s29 }
 0xed4   :  { %3485 = vrot.lane.b32.xlu0 %v4111_v24, %s3692_s15 }
 0xed8   :  { %2153 = vrot.lane.b32.xlu0 %v4103_v13, %s3693_s16 }
 0xee6   :  { %2035 = vmax.xlane.f32.xlu1 %v2034_v5 }
 0xef7   :  { %3495 = vrot.lane.b32.xlu1 %v4111_v24, %s3691_s3 }
 0xefb   :  { %2155 = vrot.lane.b32.xlu1 %v4105_v21, %s3693_s16 }
 0xf3e   :  { %v1619_v7 = vpop.xlane.xlu1 %1618 }
 0xf3f   :  { %v1825_v6 = vpop.xlane.xlu0 %1824  ;;  %v1621_v8 = vsub.f32 %v1613_v54, %v1619_v7 }
 0xf40   :  { %v1827_v16 = vsub.f32 %v1819_v56, %v1825_v6 }
 0xf41   :  { %v1624_v12 = vmul.f32 1.442695, %v1621_v8 }
 0xf42   :  { %v1830_v13 = vmul.f32 1.442695, %v1827_v16  ;;  %v3491_v23 = vpop.permute.xlu1 %3490 }
 0xf43   :  { %v1616_v9 = vpop.xlane.xlu0 %1615  ;;  %v3493_v21 = vunpack.i.h.bf16 %v3491_v23  ;;  %v3492_v26 = vunpack.i.l.bf16 %v3491_v23 }
 0xf44   :  { %v1620_v10 = vsub.f32 %v1612_v60, %v1616_v9  ;;  %v3622_v60 = vld [vmem:[%s3722_s17 + $0x8] sm:$0xff]  ;;  %s4327_s17 = sld [smem:[#allocation12_spill]] }
 0xf45   :  { %v3359_v32 = vpack.c.bf16 %v3493_v21, %v3492_v26 }
 0xf46   :  { %v1622_v17 = vmul.f32 1.442695, %v1620_v10 }
 0xf47   :  { %v1822_v18 = vpop.xlane.xlu0 %1821 }
 0xf48   :  { %3576 = vpow2.f32 %v1622_v17  ;;  %v1826_v11 = vsub.f32 %v1818_v63, %v1822_v18 }
 0xf49   :  { %3578 = vpow2.f32 %v1624_v12 }
 0xf4a   :  { %v1828_v19 = vmul.f32 1.442695, %v1826_v11 }
 0xf4b   :  { %v2039_v20 = vpop.xlane.xlu0 %2038 }
 0xf4c   :  { %3580 = vpow2.f32 %v1828_v19  ;;  %v2041_v35 = vsub.f32 %v2033_v1, %v2039_v20 }
 0xf4d   :  { %3582 = vpow2.f32 %v1830_v13 }
 0xf4e   :  { %v2044_v40 = vmul.f32 1.442695, %v2041_v35 }
 0xf4f   :  { %v3486_v25 = vpop.permute.xlu0 %3485 }
 0xf50   :  { %v3488_v27 = vunpack.i.h.bf16 %v3486_v25  ;;  %v3487_v28 = vunpack.i.l.bf16 %v3486_v25 }
 0xf52   :  { %v4169_v29 = vpop.eup %3576  ;;  %v3349_v30 = vpack.c.bf16 %v3488_v27, %v3487_v28 }
 0xf53   :  { %v4171_v31 = vpop.eup %3578  ;;  %3204 = vmatprep.mubr.msk.f32.mxu1 %vm363_vm4, %v4169_v29  ;;  %v2154_v38 = vpop.permute.xlu0 %2153  ;;  %v1626_v23 = vsel %vm363_vm4, %v4169_v29, 0.0 }
 0xf54   :  { %3205 = vmatmul.mubr.msk.f32.vlgmr.msra.gmra.mrb[20].mxu1 %vm363_vm4, %v4171_v31  ;;  %3350 = vmatprep.subr.bf16.mxu1 %v3349_v30  ;;  %v1629_v21 = vsel %vm363_vm4, %v4171_v31, 0.0 }
 0xf55   :  { %3352 = vmatpush3.bf16.msra.mxu1 %v3349_v30 }
 0xf56   :  { %v3581_v33 = vpop.eup %3580  ;;  %3360 = vmatprep.subr.bf16.mxu1 %v3359_v32 }
 0xf57   :  { %v3583_v34 = vpop.eup %3582  ;;  %3218 = vmatprep.mubr.msk.f32.mxu1 %vm363_vm4, %v3581_v33  ;;  %v1832_v0 = vsel %vm363_vm4, %v3581_v33, 0.0 }
 0xf58   :  { %3219 = vmatmul.mubr.msk.f32.vlgmr.msra.gmra.mrb[22].mxu1 %vm363_vm4, %v3583_v34  ;;  %v1835_v1 = vsel %vm363_vm4, %v3583_v34, 0.0 }
 0xf59   :  { %3362 = vmatpush3.bf16.msra.mxu1 %v3359_v32 }
 0xf73   :  { %v2036_v36 = vpop.xlane.xlu1 %2035 }
 0xf74   :  { %v2040_v37 = vsub.f32 %v2032_v4, %v2036_v36 }
 0xf76   :  { %v2042_v41 = vmul.f32 1.442695, %v2040_v37 }
 0xf77   :  { %v3496_v42 = vpop.permute.xlu1 %3495 }
 0xf78   :  { %3584 = vpow2.f32 %v2042_v41  ;;  %v3498_v44 = vunpack.i.h.bf16 %v3496_v42  ;;  %v3497_v45 = vunpack.i.l.bf16 %v3496_v42 }
 0xf79   :  { %3586 = vpow2.f32 %v2044_v40 }
 0xf7a   :  { %v3363_v46 = vpack.c.bf16 %v3498_v44, %v3497_v45 }
 0xf7b   :  { %v2156_v49 = vpop.permute.xlu1 %2155 }
 0xf7c   :  { %3365 = vmatprep.subr.msk.bf16.mxu1 %vm3932_vm3, %v3363_v46 }
 0xf82   :  { %v3585_v47 = vpop.eup %3584 }
 0xf83   :  { %v3587_v48 = vpop.eup %3586  ;;  %3232 = vmatprep.mubr.msk.f32.mxu1 %vm363_vm4, %v3585_v47  ;;  %v2046_v2 = vsel %vm363_vm4, %v3585_v47, 0.0 }
 0xf84   :  { %3233 = vmatmul.mubr.msk.f32.vlgmr.msra.gmra.mrb[24].mxu1 %vm363_vm4, %v3587_v48  ;;  %v2049_v3 = vsel %vm363_vm4, %v3587_v48, 0.0 }
 0xf85   :  { %3368 = vmatpush3.bf16.xpose.msk.msra.mxu1 %vm3932_vm3, %v3363_v46  ;;  %3239 = vmatprep.mubr.msk.f32.mxu1 %vm275_vm2, %v2154_v38 }
 0xf86   :  { %3257 = vmatprep.subr.bf16.mxu1 %v3682_v22 }
 0xf8c   :  { %3240 = vmatmul.mubr.msk.f32.vlgmr.msra.gmra.mrb[26].mxu1 %vm275_vm2, %v2156_v49  ;;  %v3516_v49 = vld [vmem:[%s4327_s17] sm:$0xff]  }
 0xf8d   :  { %3261 = vmatprep.mubr.msk.bf16.mxu1 %vm3683_vm1, %v3682_v22 }
0x1027   :  { %v4190_v39 = vpop.f32.mrb[20].mxu1 }
0x1028   :  { %v4192_v50 = vpop.f32.mrb[21].mxu1 }
0x102b   :  { %v4194_v43 = vpop.f32.mrb[22].mxu1 }
0x102c   :  { %v4196_v55 = vpop.f32.mrb[23].mxu1 }
0x1057   :  { %v4198_v53 = vpop.f32.mrb[24].mxu1 }
0x1058   :  { %v2132_v54 = vpop.f32.mrb[25].mxu1 }
0x105f   :  { %v3241_v56 = vpop.f32.mrb[26].mxu1 }
0x1060   :  { %v2245_v57 = vmul.f32 0.35355338, %v3241_v56  ;;  %v2235_v58 = vpop.f32.mrb[27].mxu1 }
0x1061   :  { %v2244_v59 = vmul.f32 0.35355338, %v2235_v58 }
0x1062   :  { %v2247_v61 = vadd.f32 %v3622_v60, %v2245_v57 }
0x1063   :  { %v2246_v52 = vadd.f32 %v3623_v51, %v2244_v59  ;;  %v2969_v51 = vld [vmem:[%s4328_s28] ss:$0 sm:$0xff] }
0x1064   :  { %v2251_v62 = vsel %vm363_vm4, %v2247_v61, -inf }
0x1065   :  { %2252 = vmax.xlane.f32.xlu1 %v2251_v62  ;;  %v2248_v63 = vsel %vm363_vm4, %v2246_v52, -inf }
0x1066   :  { %2249 = vmax.xlane.f32.xlu0 %v2248_v63 }
0x1069   :  { %1833 = vadd.xlane.f32.xlu1 %v1832_v0 }
0x106d   :  { %1836 = vadd.xlane.f32.xlu1 %v1835_v1 }
0x1071   :  { %2047 = vadd.xlane.f32.xlu1 %v2046_v2 }
0x1075   :  { %2050 = vadd.xlane.f32.xlu1 %v2049_v3 }
0x107c   :  { %3500 = vrot.lane.b32.xlu0 %v4111_v24, %s3694_s18 }
0x10f2   :  { %v2253_v4 = vpop.xlane.xlu1 %2252 }
0x10f3   :  { %v2255_v5 = vsub.f32 %v2247_v61, %v2253_v4  ;;  %v2250_v7 = vpop.xlane.xlu0 %2249 }
0x10f4   :  { %v2254_v6 = vsub.f32 %v2246_v52, %v2250_v7 }
0x10f5   :  { %v2258_v8 = vmul.f32 1.442695, %v2255_v5 }
0x10f6   :  { %v2256_v9 = vmul.f32 1.442695, %v2254_v6  ;;  %v1834_v18 = vpop.xlane.xlu1 %1833 }
0x10f7   :  { %3588 = vpow2.f32 %v2258_v8  ;;  %v3501_v10 = vpop.permute.xlu0 %3500 }
0x10f8   :  { %3590 = vpow2.f32 %v2256_v9  ;;  %v3503_v12 = vunpack.i.h.bf16 %v3501_v10  ;;  %v3502_v16 = vunpack.i.l.bf16 %v3501_v10 }
0x10fa   :  { %v3369_v17 = vpack.c.bf16 %v3503_v12, %v3502_v16  ;;  %v1837_v24 = vpop.xlane.xlu1 %1836 }
0x10fc   :  { %3370 = vmatprep.subr.bf16.mxu0 %v3369_v17 }
0x10fd   :  { %3372 = vmatpush3.bf16.msra.mxu0 %v3369_v17 }
0x10fe   :  { %3249 = vmatprep.subr.bf16.mxu0 %v3682_v22  ;;  %v2048_v25 = vpop.xlane.xlu1 %2047 }
0x10ff   :  { %3592 = vrcp.f32 %v2048_v25 }
0x1100   :  { %3594 = vrcp.f32 %v1834_v18 }
0x1101   :  { %v3589_v11 = vpop.eup %3588  ;;  %3596 = vrcp.f32 %v1837_v24 }
0x1102   :  { %v3591_v13 = vpop.eup %3590  ;;  %v2263_v19 = vsel %vm363_vm4, %v3589_v11, 0.0  ;;  %v2051_v26 = vpop.xlane.xlu1 %2050 }
0x1103   :  { %2264 = vadd.xlane.f32.xlu1 %v2263_v19  ;;  %3246 = vmatprep.mubr.msk.f32.mxu0 %vm363_vm4, %v3591_v13  ;;  %v2260_v20 = vsel %vm363_vm4, %v3591_v13, 0.0  ;;  %3598 = vrcp.f32 %v2051_v26  ;;  %v3519_v13 = vld [vmem:[%s4329_s1 + $0x8] sm:$0xff]  }
0x1104   :  { %2261 = vadd.xlane.f32.xlu0 %v2260_v20  ;;  %3247 = vmatmul.mubr.msk.f32.vlgmr.msra.gmra.mrb[22].mxu0 %vm363_vm4, %v3589_v11 }
0x1105   :  { %3253 = vmatprep.mubr.msk.bf16.mxu0 %vm3683_vm1, %v3682_v22  ;;  %3250 = vmatpush3.bf16.msra.mxu0 %v3516_v49 }
0x1106   :  { %3251 = vmatprep.subr.bf16.mxu0 %v3682_v22 }
0x1107   :  { %1627 = vadd.xlane.f32.xlu1 %v1626_v23 }
0x1109   :  { %v3593_v27 = vpop.eup %3592 }
0x110a   :  { %v3595_v28 = vpop.eup %3594  ;;  %v2141_v30 = vmul.f32 %v3593_v27, %v2132_v54  ;;  %v2973_v27 = vld [vmem:[%s4330_s2] ss:$0 sm:$0xff] }
0x110b   :  { %1630 = vadd.xlane.f32.xlu1 %v1629_v21  ;;  %v1927_v32 = vmul.f32 %v3595_v28, %v4196_v55  ;;  %v3597_v33 = vpop.eup %3596 }
0x110c   :  { %v1928_v29 = vmul.f32 %v3597_v33, %v4194_v43 }
0x110d   :  { %v3599_v34 = vpop.eup %3598 }
0x110e   :  { %v2142_v31 = vmul.f32 %v3599_v34, %v4198_v53 }
0x111a   :  { %2145 = vrot.lane.b32.xlu0 %v2141_v30, %s3695_s22 }
0x111c   :  { %1931 = vrot.lane.b32.xlu1 %v1927_v32, %s3696_s23 }
0x1120   :  { %1933 = vrot.lane.b32.xlu1 %v1928_v29, %s3696_s23  ;;  %v2974_v29 = vld [vmem:[%s4331_s7] ss:$0 sm:$0xff] }
0x1124   :  { %2147 = vrot.lane.b32.xlu1 %v2142_v31, %s3695_s22 }
0x1190   :  { %v2265_v35 = vpop.xlane.xlu1 %2264 }
0x1191   :  { %v2262_v41 = vpop.xlane.xlu0 %2261 }
0x1194   :  { %v1628_v36 = vpop.xlane.xlu1 %1627 }
0x1195   :  { %3600 = vrcp.f32 %v1628_v36  ;;  %v2146_v47 = vpop.permute.xlu0 %2145 }
0x1198   :  { %v1631_v37 = vpop.xlane.xlu1 %1630 }
0x1199   :  { %3602 = vrcp.f32 %v1631_v37  ;;  %v3520_v37 = vld [vmem:[%s4332_s10] sm:$0xff]  }
0x119a   :  { %3604 = vrcp.f32 %v2265_v35 }
0x119b   :  { %3606 = vrcp.f32 %v2262_v41  ;;  %v3522_v41 = vld [vmem:[%s4332_s10 + $0x10] sm:$0xff]  }
0x119c   :  { %v1932_v40 = vpop.permute.xlu1 %1931 }
0x119f   :  { %v3601_v42 = vpop.eup %3600 }
0x11a0   :  { %v1721_v44 = vmul.f32 %v3601_v42, %v4192_v50  ;;  %v1934_v45 = vpop.permute.xlu1 %1933  ;;  %v3517_v50 = vld [vmem:[%s4327_s17 + $0x8] sm:$0xff]   ;;  %v3523_v42 = vld [vmem:[%s4332_s10 + $0x18] sm:$0xff]  }
0x11a1   :  { %3252 = vmatpush3.bf16.msra.mxu0 %v3517_v50 }
0x11a2   :  { %1723 = vst.msk [vmem:[#allocation2] sm:$0xff] %vm275_vm2, %v1721_v44  ;;  %3265 = vmatprep.subr.bf16.mxu0 %v3682_v22  ;;  %v2975_v44 = vld [vmem:[%s4333_s11] ss:$0 sm:$0xff] }
0x11a3   :  { %v3603_v46 = vpop.eup %3602  ;;  %1937 = vst.msk [vmem:[#allocation2] sm:$0xff] %vm687_vm5, %v1932_v40  ;;  %v3521_v40 = vld [vmem:[%s4332_s10 + $0x8] sm:$0xff]  }
0x11a4   :  { %v1722_v48 = vmul.f32 %v3603_v46, %v4190_v39  ;;  %2151 = vst.msk [vmem:[#allocation2] sm:$0xff] %vm902_vm6, %v2146_v47  ;;  %v2148_v38 = vpop.permute.xlu1 %2147  ;;  %v3605_v43 = vpop.eup %3604 }
0x11a5   :  { %v3607_v53 = vpop.eup %3606 }
0x11a6   :  { %1724 = vst.msk [vmem:[#allocation2 + $0x8] sm:$0xff] %vm275_vm2, %v1722_v48 }
0x11a7   :  { %1938 = vst.msk [vmem:[#allocation2 + $0x8] sm:$0xff] %vm687_vm5, %v1934_v45 }
0x11a8   :  { %2152 = vst.msk [vmem:[#allocation2 + $0x8] sm:$0xff] %vm902_vm6, %v2148_v38 }
0x11d7   :  { %v3248_v55 = vpop.f32.mrb[22].mxu0 }
0x11d8   :  { %v2356_v39 = vmul.f32 %v3605_v43, %v3248_v55  ;;  %v2346_v54 = vpop.f32.mrb[23].mxu0 }
0x11d9   :  { %v2355_v56 = vmul.f32 %v3607_v53, %v2346_v54 }
0x11db   :  { %2359 = vrot.lane.b32.xlu1 %v2355_v56, %s3697_s26 }
0x11df   :  { %2361 = vrot.lane.b32.xlu1 %v2356_v39, %s3697_s26 }
0x124d   :  { %v2360_v57 = vpop.permute.xlu1 %2359 }
0x124e   :  { %2365 = vst.msk [vmem:[#allocation2] sm:$0xff] %vm1117_vm7, %v2360_v57 }
0x1251   :  { %v2362_v58 = vpop.permute.xlu1 %2361 }
0x1252   :  { %2366 = vst.msk [vmem:[#allocation2 + $0x8] sm:$0xff] %vm1117_vm7, %v2362_v58 }
0x1255   :  { %v2367_v59 = vld [vmem:[#allocation2] sm:$0xff] }
0x1259   :  { %v2368_v60 = vld [vmem:[#allocation2 + $0x8] sm:$0xff] }
0x125a   :  { %v2369_v61 = vpack.c.bf16 %v2368_v60, %v2367_v59 }
0x125c   :  { %3254 = vmatmul.mubr.msk.bf16.vlgmr.msra.gmra.mrb[24].mxu0 %vm155_vm0, %v2369_v61 }
0x125d   :  { %3273 = vmatprep.mubr.msk.bf16.mxu0 %vm3683_vm1, %v3682_v22  ;;  %3266 = vmatpush3.bf16.msra.mxu0 %v3520_v37  ;;  %v2986_v37 = vld [vmem:[%s4337_s13] ss:$0 sm:$0xff] }
0x125e   :  { %3267 = vmatprep.subr.bf16.mxu0 %v3682_v22 }
0x1261   :  { %3268 = vmatpush3.bf16.msra.mxu0 %v3521_v40 }
0x1262   :  { %3269 = vmatprep.subr.bf16.mxu0 %v3682_v22 }
0x1265   :  { %3270 = vmatpush3.bf16.msra.mxu0 %v3522_v41 }
0x1266   :  { %3271 = vmatprep.subr.bf16.mxu0 %v3682_v22 }
0x1269   :  { %3272 = vmatpush3.bf16.msra.mxu0 %v3523_v42 }
0x132f   :  { %v2430_v52 = vpop.f32.mrb[24].mxu0 }
0x1330   :  { %v2431_v62 = vadd.f32 %v2969_v51, %v2430_v52  ;;  %v3255_v63 = vpop.f32.mrb[25].mxu0 }
0x1331   :  { %v2433_v0 = vpop.f32.mrb[26].mxu0 }
0x1332   :  { %v2437_v1 = vadd.f32 %v2431_v62, %v4095_v14  ;;  %v2434_v2 = vadd.f32 %v2969_v51, %v2433_v0  ;;  %v3256_v3 = vpop.f32.mrb[27].mxu0 }
0x1333   :  { %v2979_v3 = vld [vmem:[%s4334_s0] ss:$0 sm:$0xff] }
0x1334   :  { %v2441_v4 = vsel %vm155_vm0, %v2437_v1, 0.0  ;;  %v2438_v5 = vadd.f32 %v2434_v2, %v4097_v15  ;;  %v3518_v15 = vld [vmem:[%s4329_s1] sm:$0xff]  }
0x1335   :  { %2442 = vadd.xlane.f32.xlu1 %v2441_v4  ;;  %3258 = vmatpush3.bf16.msra.mxu1 %v3518_v15 }
0x1336   :  { %v2444_v7 = vsel %vm155_vm0, %v2438_v5, 0.0  ;;  %3259 = vmatprep.subr.bf16.mxu1 %v3682_v22 }
0x1337   :  { %2445 = vadd.xlane.f32.xlu0 %v2444_v7 }
0x1339   :  { %3260 = vmatpush3.bf16.msra.mxu1 %v3519_v13 }
0x133a   :  { %3277 = vmatprep.subr.bf16.mxu1 %v3682_v22 }
0x13c2   :  { %v2443_v6 = vpop.xlane.xlu1 %2442 }
0x13c3   :  { %v2447_v8 = vmul.f32 0.03125, %v2443_v6 }
0x13c4   :  { %v2446_v9 = vpop.xlane.xlu0 %2445 }
0x13c5   :  { %v2449_v10 = vsub.f32 %v2437_v1, %v2447_v8  ;;  %v2448_v12 = vmul.f32 0.03125, %v2446_v9 }
0x13c7   :  { %v2450_v16 = vsub.f32 %v2438_v5, %v2448_v12  ;;  %v2451_v17 = vmul.f32 %v2449_v10, %v2449_v10 }
0x13c9   :  { %v2453_v14 = vsel %vm155_vm0, %v2451_v17, 0.0  ;;  %v2452_v18 = vmul.f32 %v2450_v16, %v2450_v16 }
0x13ca   :  { %2454 = vadd.xlane.f32.xlu1 %v2453_v14 }
0x13cb   :  { %v2456_v11 = vsel %vm155_vm0, %v2452_v18, 0.0 }
0x13cc   :  { %2457 = vadd.xlane.f32.xlu0 %v2456_v11 }
0x1457   :  { %v2455_v24 = vpop.xlane.xlu1 %2454 }
0x1458   :  { %v2459_v19 = vmul.f32 0.03125, %v2455_v24 }
0x1459   :  { %v2458_v20 = vpop.xlane.xlu0 %2457 }
0x145a   :  { %v2461_v23 = vadd.f32 1e-12, %v2459_v19  ;;  %v2460_v25 = vmul.f32 0.03125, %v2458_v20 }
0x145c   :  { %3608 = vrsqrt.f32 %v2461_v23  ;;  %v2462_v21 = vadd.f32 1e-12, %v2460_v25 }
0x145e   :  { %3610 = vrsqrt.f32 %v2462_v21  ;;  %v3524_v21 = vld [vmem:[%s4335_s5] sm:$0xff]  }
0x1466   :  { %v3609_v26 = vpop.eup %3608 }
0x1467   :  { %v2465_v28 = vmul.f32 %v3609_v26, %v2449_v10  ;;  %v3525_v26 = vld [vmem:[%s4335_s5 + $0x8] sm:$0xff]  }
0x1468   :  { %v3611_v30 = vpop.eup %3610 }
0x1469   :  { %v2473_v32 = vmul.f32 %v2973_v27, %v2465_v28  ;;  %v2466_v33 = vmul.f32 %v3611_v30, %v2450_v16 }
0x146b   :  { %v2474_v34 = vmul.f32 %v2973_v27, %v2466_v33  ;;  %v2481_v31 = vadd.f32 %v2974_v29, %v2473_v32 }
0x146d   :  { %v2482_v35 = vadd.f32 %v2974_v29, %v2474_v34 }
0x146f   :  { %v2483_v36 = vpack.c.bf16 %v2482_v35, %v2481_v31 }
0x1471   :  { %3262 = vmatmul.mubr.msk.bf16.vlgmr.msra.gmra.mrb[28].mxu1 %vm155_vm0, %v2483_v36 }
0x1472   :  { %3281 = vmatprep.mubr.msk.bf16.mxu1 %vm3683_vm1, %v3682_v22  ;;  %3278 = vmatpush3.bf16.msra.mxu1 %v3524_v21 }
0x1473   :  { %3279 = vmatprep.subr.bf16.mxu1 %v3682_v22 }
0x1476   :  { %3280 = vmatpush3.bf16.msra.mxu1 %v3525_v26 }
0x1477   :  { %3285 = vmatprep.subr.bf16.mxu1 %v3682_v22 }
0x1544   :  { %v2544_v45 = vpop.f32.mrb[28].mxu1 }
0x1545   :  { %v2545_v46 = vadd.f32 %v2975_v44, %v2544_v45  ;;  %v3263_v47 = vpop.f32.mrb[29].mxu1 }
0x1546   :  { %v2547_v48 = vpop.f32.mrb[30].mxu1 }
0x1547   :  { %v2553_v38 = vmul.f32 0.044715, %v2545_v46  ;;  %v2548_v49 = vadd.f32 %v2975_v44, %v2547_v48  ;;  %v3264_v50 = vpop.f32.mrb[31].mxu1  ;;  %v2551_v52 = vmul.f32 0.5, %v2545_v46 }
0x1549   :  { %v2555_v43 = vmul.f32 %v2553_v38, %v2545_v46  ;;  %v2554_v55 = vmul.f32 0.044715, %v2548_v49  ;;  %v2552_v62 = vmul.f32 0.5, %v2548_v49 }
0x154b   :  { %v2557_v53 = vmul.f32 %v2555_v43, %v2545_v46  ;;  %v2556_v39 = vmul.f32 %v2554_v55, %v2548_v49  ;;  %v3526_v55 = vld [vmem:[%s3867_s27] sm:$0xff]  }
0x154d   :  { %v2559_v54 = vadd.f32 %v2557_v53, %v2545_v46  ;;  %v2558_v56 = vmul.f32 %v2556_v39, %v2548_v49  ;;  %v3527_v53 = vld [vmem:[%s3867_s27 + $0x8] sm:$0xff]   ;;  %v2987_v39 = vld [vmem:[%s3862_s20] ss:$0 sm:$0xff]  ;;  %s3624_s20 = scalar_lea.vmem %s2852_s25, 32 }
0x154e   :  { %p3625_p0 = scmp.ne.s32.totalorder %s2852_s25, %s3624_s20  ;;  %p3630_p2 = scmp.lt.s32.totalorder %s3624_s20, %s3624_s20 }
0x154f   :  { %v2561_v57 = vmul.f32 0.7978846, %v2559_v54  ;;  %v2560_v58 = vadd.f32 %v2558_v56, %v2548_v49 }
0x1550   :  { %p3631_p3 = por %p3630_p2, %p3629_p1 }
0x1551   :  { %3612 = vtanh.f32 %v2561_v57  ;;  %v2562_v59 = vmul.f32 0.7978846, %v2560_v58 }
0x1552   :  { %p3632_p4 = pnand %p3631_p3, %p3625_p0 }
0x1553   :  { %3614 = vtanh.f32 %v2562_v59 }
0x155b   :  { %v3613_v60 = vpop.eup %3612 }
0x155c   :  { %v2565_v61 = vadd.f32 1.0, %v3613_v60 }
0x155d   :  { %v3615_v51 = vpop.eup %3614 }
0x155e   :  { %v2566_v63 = vadd.f32 1.0, %v3615_v51  ;;  %v2567_v0 = vmul.f32 %v2565_v61, %v2551_v52  ;;  %v2991_v51 = vld [vmem:[%s3872_s4] ss:$0 sm:$0xff] }
0x1560   :  { %v2568_v1 = vmul.f32 %v2566_v63, %v2552_v62 }
0x1562   :  { %v2569_v2 = vpack.c.bf16 %v2568_v1, %v2567_v0 }
0x1564   :  { %3274 = vmatmul.mubr.msk.bf16.vlgmr.msra.gmra.mrb[28].mxu0 %vm1362_vm8, %v2569_v2 }
0x1637   :  { %v2646_v4 = vpop.f32.mrb[28].mxu0 }
0x1638   :  { %v2647_v5 = vadd.f32 %v2979_v3, %v2646_v4  ;;  %v3275_v7 = vpop.f32.mrb[29].mxu0 }
0x1639   :  { %v2649_v6 = vpop.f32.mrb[30].mxu0 }
0x163a   :  { %v2650_v8 = vadd.f32 %v2979_v3, %v2649_v6  ;;  %v3276_v9 = vpop.f32.mrb[31].mxu0  ;;  %v2653_v10 = vadd.f32 %v2647_v5, %v2481_v31  ;;  %v2985_v31 = vld [vmem:[%s4336_s9] ss:$0 sm:$0xff] }
0x163c   :  { %v2654_v12 = vadd.f32 %v2650_v8, %v2482_v35  ;;  %v2657_v16 = vsel %vm155_vm0, %v2653_v10, 0.0 }
0x163d   :  { %2658 = vadd.xlane.f32.xlu0 %v2657_v16 }
0x163e   :  { %v2660_v17 = vsel %vm155_vm0, %v2654_v12, 0.0 }
0x163f   :  { %2661 = vadd.xlane.f32.xlu1 %v2660_v17 }
0x16ca   :  { %v2659_v14 = vpop.xlane.xlu0 %2658 }
0x16cb   :  { %v2663_v18 = vmul.f32 0.03125, %v2659_v14 }
0x16cc   :  { %v2662_v11 = vpop.xlane.xlu1 %2661 }
0x16cd   :  { %v2665_v15 = vsub.f32 %v2653_v10, %v2663_v18  ;;  %v2664_v13 = vmul.f32 0.03125, %v2662_v11 }
0x16cf   :  { %v2666_v24 = vsub.f32 %v2654_v12, %v2664_v13  ;;  %v2667_v19 = vmul.f32 %v2665_v15, %v2665_v15 }
0x16d1   :  { %v2669_v20 = vsel %vm155_vm0, %v2667_v19, 0.0  ;;  %v2668_v23 = vmul.f32 %v2666_v24, %v2666_v24 }
0x16d2   :  { %2670 = vadd.xlane.f32.xlu0 %v2669_v20 }
0x16d3   :  { %v2672_v25 = vsel %vm155_vm0, %v2668_v23, 0.0 }
0x16d4   :  { %2673 = vadd.xlane.f32.xlu1 %v2672_v25 }
0x175f   :  { %v2671_v27 = vpop.xlane.xlu0 %2670 }
0x1760   :  { %v2675_v28 = vmul.f32 0.03125, %v2671_v27 }
0x1761   :  { %v2674_v30 = vpop.xlane.xlu1 %2673 }
0x1762   :  { %v2677_v32 = vadd.f32 1e-12, %v2675_v28  ;;  %v2676_v33 = vmul.f32 0.03125, %v2674_v30 }
0x1764   :  { %3616 = vrsqrt.f32 %v2677_v32  ;;  %v2678_v29 = vadd.f32 1e-12, %v2676_v33 }
0x1766   :  { %3618 = vrsqrt.f32 %v2678_v29 }
0x176e   :  { %v3617_v34 = vpop.eup %3616 }
0x176f   :  { %v2681_v35 = vmul.f32 %v3617_v34, %v2665_v15 }
0x1770   :  { %v3619_v36 = vpop.eup %3618 }
0x1771   :  { %v2689_v40 = vmul.f32 %v2985_v31, %v2681_v35  ;;  %v2682_v41 = vmul.f32 %v3619_v36, %v2666_v24 }
0x1773   :  { %v2697_v42 = vadd.f32 %v2986_v37, %v2689_v40  ;;  %v2690_v44 = vmul.f32 %v2985_v31, %v2682_v41 }
0x1775   :  { %v2698_v45 = vadd.f32 %v2986_v37, %v2690_v44  ;;  %v2699_v46 = vpack.c.bf16 %v2697_v42, %v2697_v42 }
0x1777   :  { %v2700_v47 = vpack.c.bf16 %v2698_v45, %v2698_v45  ;;  %v2714_v38 = vunpack.c.l.b16 %v2699_v46 }
0x1779   :  { %v2715_v48 = vunpack.c.l.b16 %v2700_v47 }
0x177b   :  { %v2716_v49 = vrot.slane %v2715_v48, 7 }
0x177d   :  { %v2718_v50 = vsel %vm2717_vm9, %v2716_v49, %v2714_v38 }
0x177e   :  { %v2719_v43 = vpack.c.b16 %v2718_v50, %v2718_v50 }
0x1780   :  { %3282 = vmatmul.mubr.msk.bf16.vlgmr.msra.gmra.mrb[32].mxu1 %vm155_vm0, %v2719_v43 }
0x1781   :  { %3289 = vmatprep.mubr.msk.bf16.mxu1 %vm3683_vm1, %v3682_v22  ;;  %3286 = vmatpush3.bf16.msra.mxu1 %v3526_v55 }
0x1782   :  { %3287 = vmatprep.subr.bf16.mxu1 %v3682_v22 }
0x1785   :  { %3288 = vmatpush3.bf16.msra.mxu1 %v3527_v53 }
0x1853   :  { %v2769_v54 = vpop.f32.mrb[32].mxu1 }
0x1854   :  { %v2770_v56 = vadd.f32 %v2987_v39, %v2769_v54  ;;  %v3283_v57 = vpop.f32.mrb[33].mxu1 }
0x1855   :  { %v2772_v58 = vpop.f32.mrb[34].mxu1 }
0x1856   :  { %3620 = vtanh.f32 %v2770_v56  ;;  %v3284_v59 = vpop.f32.mrb[35].mxu1 }
0x1860   :  { %v3621_v60 = vpop.eup %3620 }
0x1861   :  { %v2776_v61 = vpack.c.bf16 %v3621_v60, %v3621_v60 }
0x1863   :  { %3290 = vmatmul.mubr.msk.bf16.vlgmr.msra.gmra.mrb[36].mxu1 %vm155_vm0, %v2776_v61 }
0x1936   :  { %v2837_v52 = vpop.f32.mrb[36].mxu1 }
0x1937   :  { %v2838_v62 = vadd.f32 %v2991_v51, %v2837_v52  ;;  %v3291_v22 = vpop.f32.mrb[37].mxu1 }
0x1938   :  { %v2840_v63 = vpop.f32.mrb[38].mxu1 }
0x1939   :  { %v3292_v0 = vpop.f32.mrb[39].mxu1  ;;  %2844 = vst.msk [vmem:[#allocation3] sm:$0x3] %vm2843_vm10, %v2838_v62 }
0x193a   :  { %3635 = shalt.err (!%p3632_p4)
}
0x193b   :  { %s3636_s27 = scalar_lea.hbm %s3877_s6, 32 }
0x193c   :  { %p3637_p5 = scmp.ne.s32.totalorder %s3877_s6, %s3636_s27  ;;  %p3640_p6 = scmp.lt.u32.totalorder %s3636_s27, %s3877_s6 }
0x193e   :  { %p3642_p7 = pnand %p3640_p6, %p3637_p5 }
0x1940   :  { %3645 = shalt.err (!%p3642_p7)
}
0x1941   :  { %2854 = dma.vmem_to_hbm [thread:$0]  %s2852_s25, 32, %s3877_s6, [#allocation4]  }
0x1942   :  { %3646 = dma.done.wait [#allocation4], 32  }
0x1943   :  { %3647 = vsyncadd [#allocation4], 4294967264 }
0x1944   :  { %2858 = vsyncpa [#allocation4], 1 }

</bundles_post_ra>
